<compile_context>
chip_gen: v7x
topology: tpu7x:2x2x1
jax: 0.10.0
libtpu: 0.0.40
codegen_flags: <defaults>
</compile_context>

<pallas_src>
import functools

import jax
import jax.numpy as jnp
import numpy as np
from jax.experimental import pallas as pl
from jax.experimental.pallas import tpu as pltpu

_LN_EPS = 1e-5


def _cdiv(a, b):
    return -(-a // b)


def _round_up(a, m):
    return _cdiv(a, m) * m


def _pick_time_tile(t_out, n_pad, khalo, target_rows=1024):
    """t_tile is a multiple of khalo (so the halo block evenly divides the main
    block), targets ~target_rows rows per grid step, keeps >= 2 grid steps when
    the sequence allows, and prefers an even tile count (v7x megacore shards
    the 'parallel' time axis across 2 TensorCores)."""
    max_units = _cdiv(t_out, khalo)
    unit_rows = khalo * n_pad
    upt = max(1, int(round(target_rows / unit_rows)))
    upt = min(upt, max_units)
    if max_units >= 2:                       # keep >= 2 grid steps if possible
        upt = min(upt, _cdiv(max_units, 2))
    if upt > 1:                              # mild even-tile-count preference
        n_tiles = _cdiv(t_out, upt * khalo)
        if n_tiles % 2 == 1 and _cdiv(t_out, (upt - 1) * khalo) % 2 == 0:
            upt -= 1
    return upt * khalo


def _vmem_limit_bytes(rows, h_rows, c, kw):
    """Footprint-derived scoped-VMEM budget (with headroom)."""
    win = (rows + h_rows) * c
    inputs = 2 * (win * 2)                        # double-buffered main+halo (bf16)
    outputs = 2 * (rows * c * 2)                  # double-buffered output (bf16)
    weights = (kw + 2) * c * c * 2 + 8 * c * 4    # single-buffered invariants
    scratch = win * 2                             # bf16 window scratch
    work = 8 * rows * c * 4                       # f32 intermediates / spills
    total = 2 * (inputs + outputs + weights + scratch + work)
    return int(max(32 << 20, min(total, 96 << 20)))


def _const_spec(shape):
    """BlockSpec for a grid-invariant operand: constant index map and (when
    supported) single buffering so weights are not silently double-buffered."""
    zeros = (0,) * len(shape)
    idx = lambda i: zeros
    try:
        return pl.BlockSpec(shape, idx, pipeline_mode=pl.Buffered(1))
    except Exception:  # pragma: no cover - jax without BlockSpec pipeline_mode
        return pl.BlockSpec(shape, idx)


def _layer_norm(x, g, b):
    # Shared centered value -> 2 cross-lane reductions; f32 math; rsqrt on EUP.
    mean = jnp.mean(x, axis=-1, keepdims=True)
    centered = x - mean
    var = jnp.mean(centered * centered, axis=-1, keepdims=True)
    return centered * jax.lax.rsqrt(var + _LN_EPS) * g + b


# ----------------------------------------------------------------------------
# Fused (conv block + fc block) Pallas kernel
# ----------------------------------------------------------------------------
def _tds_block_pair_kernel(xm_ref, xh_ref, wt_ref, w1_ref, w2_ref, vec_ref,
                           out_ref, win_ref, *, kw, n, res_off):
    rows = out_ref.shape[0]

    # Stitch the main tile and its (kw-1)*n halo rows into one contiguous bf16
    # window in persistent VMEM scratch (each HBM input row is DMA'd ~once).
    win_ref[0:rows, :] = xm_ref[...]
    win_ref[rows:, :] = xh_ref[...]

    vec = vec_ref[...]                     # packed (8, C) bias / LayerNorm table
    b_conv = vec[0:1]
    g1, bt1 = vec[1:2], vec[2:3]
    b1, b2 = vec[3:4], vec[4:5]
    g2, bt2 = vec[5:6], vec[6:7]

    # ---- TDSConv2dBlockWithDropout ----
    # (1, kw) temporal conv as kw per-tap (C, C) MXU matmuls, f32 accumulation.
    acc = jnp.dot(win_ref[0:rows, :], wt_ref[0],
                  preferred_element_type=jnp.float32)
    for k in range(1, kw):
        acc = acc + jnp.dot(win_ref[k * n:k * n + rows, :], wt_ref[k],
                            preferred_element_type=jnp.float32)
    acc = jnp.maximum(acc + b_conv, 0.0)               # bias + ReLU (dropout == id)
    acc = acc + win_ref[res_off:res_off + rows, :].astype(jnp.float32)   # skip
    y1 = _layer_norm(acc, g1, bt1)

    # ---- TDSFullyConnectedBlockWithDropout ----
    h = jnp.dot(y1.astype(jnp.bfloat16), w1_ref[...],
                preferred_element_type=jnp.float32)
    h = jnp.maximum(h + b1, 0.0)                       # ReLU (dropout == identity)
    y2 = jnp.dot(h.astype(jnp.bfloat16), w2_ref[...],
                 preferred_element_type=jnp.float32)
    y2 = y2 + b2 + y1                                  # bias + skip
    out_ref[...] = _layer_norm(y2, g2, bt2).astype(out_ref.dtype)


# ----------------------------------------------------------------------------
# Wrapper: padding, tiling, BlockSpecs
# ----------------------------------------------------------------------------
def tds_block_pair_pallas(x, p, kernel_width):
    """One fused (TDSConv2dBlockWithDropout, TDSFullyConnectedBlockWithDropout).
    x: (T, n_pad, C) bf16 with n_pad % 8 == 0."""
    kw = kernel_width
    t_in, n, c = x.shape
    assert n % 8 == 0
    pad_t = (kw - 1) // 2
    d = (kw - 1) - 2 * pad_t                 # time shrinkage (0 for odd kw)
    t_out = t_in - d
    khalo = max(kw - 1, 1)

    t_tile = _pick_time_tile(t_out, n, khalo)
    n_tiles = _cdiv(t_out, t_tile)
    rows = t_tile * n                        # rows per grid step (multiple of 8)
    h_rows = khalo * n                       # halo rows per grid step
    upt = t_tile // khalo                    # halo blocks per main block

    # Zero-padded timeline covering n_tiles main tiles plus one trailing halo.
    t_total = n_tiles * t_tile + khalo
    x_pad = jnp.pad(x, ((pad_t, t_total - t_in - pad_t), (0, 0), (0, 0)))
    x_flat = x_pad.reshape(t_total * n, c)

    kernel = functools.partial(_tds_block_pair_kernel, kw=kw, n=n,
                               res_off=(kw - 1 - pad_t) * n)

    out_flat = pl.pallas_call(
        kernel,
        out_shape=jax.ShapeDtypeStruct((n_tiles * rows, c), jnp.bfloat16),
        grid=(n_tiles,),
        in_specs=[
            pl.BlockSpec((rows, c), lambda i: (i, 0)),               # main tile i
            pl.BlockSpec((h_rows, c), lambda i: ((i + 1) * upt, 0)),  # halo rows only
            _const_spec(p["w_taps"].shape),
            _const_spec(p["w1"].shape),
            _const_spec(p["w2"].shape),
            _const_spec(p["vec"].shape),
        ],
        out_specs=pl.BlockSpec((rows, c), lambda i: (i, 0)),
        scratch_shapes=[pltpu.VMEM((rows + h_rows, c), jnp.bfloat16)],
        compiler_params=pltpu.CompilerParams(
            dimension_semantics=("parallel",),
            vmem_limit_bytes=_vmem_limit_bytes(rows, h_rows, c, kw)),
    )(x_flat, x_flat, p["w_taps"], p["w1"], p["w2"], p["vec"])

    return out_flat.reshape(n_tiles * t_tile, n, c)[:t_out]


def tds_conv_encoder_pallas(x, prepped_params, kernel_width):
    t, n, c = x.shape
    n_pad = _round_up(n, 8)                  # sublane-aligned tap/residual slices
    xb = x.astype(jnp.bfloat16)              # bf16 inter-block activations
    if n_pad != n:
        xb = jnp.pad(xb, ((0, 0), (0, n_pad - n), (0, 0)))
    for p in prepped_params:
        xb = tds_block_pair_pallas(xb, p, kernel_width)
    return xb[:, :n].astype(jnp.float32)


# ----------------------------------------------------------------------------
# One-time parameter re-layout (NOT per forward call)
# ----------------------------------------------------------------------------
def prepare_params(params, kernel_width):
    prepped = []
    for p in params:
        ch = p["conv_w"].shape[0]
        c = p["ln1_g"].shape[0]
        wd = c // ch
        eye = jnp.eye(wd, dtype=jnp.float32)
        # Per-tap (C, C) weight, block-diagonal over width, laid out for x @ W.
        w_taps = jnp.stack(
            [jnp.kron(p["conv_w"][:, :, 0, k].T, eye) for k in range(kernel_width)])
        vec = jnp.zeros((8, c), jnp.float32)
        vec = vec.at[0].set(jnp.repeat(p["conv_b"], wd))
        vec = vec.at[1].set(p["ln1_g"])
        vec = vec.at[2].set(p["ln1_b"])
        vec = vec.at[3].set(p["fc_b1"])
        vec = vec.at[4].set(p["fc_b2"])
        vec = vec.at[5].set(p["ln2_g"])
        vec = vec.at[6].set(p["ln2_b"])
        prepped.append({
            "w_taps": w_taps.astype(jnp.bfloat16),     # (kw, C, C)
            "w1": p["fc_w1"].T.astype(jnp.bfloat16),   # (C, C) for x @ W
            "w2": p["fc_w2"].T.astype(jnp.bfloat16),
            "vec": vec,                                # (8, C) packed vectors
        })
    return prepped


# ----------------------------------------------------------------------------
# Pure-JAX reference (PyTorch forward semantics, eval mode), mirroring the
# kernel's precision path: bf16 inter-block activations / matmul inputs with
# f32 accumulation, f32 LayerNorm / residual math.
# ----------------------------------------------------------------------------
def _layer_norm_ref(x, g, b):
    mean = jnp.mean(x, -1, keepdims=True)
    centered = x - mean
    var = jnp.mean(centered * centered, -1, keepdims=True)
    return centered * jax.lax.rsqrt(var + _LN_EPS) * g + b


def _conv_block_ref(x_bf, conv_w, conv_b, g, b, kw):
    t_in, n, c = x_bf.shape
    ch = conv_w.shape[0]
    wd = c // ch
    pad_t = (kw - 1) // 2
    t_out = t_in + 2 * pad_t - (kw - 1)
    xp = jnp.pad(x_bf, ((pad_t, pad_t), (0, 0), (0, 0)))
    xp4 = xp.reshape(t_in + 2 * pad_t, n, ch, wd)
    w = conv_w[:, :, 0, :].astype(jnp.bfloat16)          # (c_out, c_in, kw)
    out = jnp.zeros((t_out, n, ch, wd), jnp.float32)
    for k in range(kw):
        out = out + jnp.einsum("tniw,oi->tnow", xp4[k:k + t_out], w[:, :, k],
                               preferred_element_type=jnp.float32)
    out = out + conv_b[None, None, :, None]
    out = jnp.maximum(out, 0.0).reshape(t_out, n, c)
    out = out + x_bf[t_in - t_out:].astype(jnp.float32)
    return _layer_norm_ref(out, g, b)


def _fc_block_ref(x, w1, b1, w2, b2, g, bq):
    h = jnp.dot(x.astype(jnp.bfloat16), w1.T.astype(jnp.bfloat16),
                preferred_element_type=jnp.float32) + b1
    h = jnp.maximum(h, 0.0)
    y = jnp.dot(h.astype(jnp.bfloat16), w2.T.astype(jnp.bfloat16),
                preferred_element_type=jnp.float32) + b2
    return _layer_norm_ref(y + x, g, bq)


def tds_conv_encoder_ref(x, params, kernel_width):
    y = x
    for p in params:
        y_bf = y.astype(jnp.bfloat16)                    # inter-block bf16 (as kernel)
        z = _conv_block_ref(y_bf, p["conv_w"], p["conv_b"], p["ln1_g"],
                            p["ln1_b"], kernel_width)
        y = _fc_block_ref(z, p["fc_w1"], p["fc_b1"], p["fc_w2"], p["fc_b2"],
                          p["ln2_g"], p["ln2_b"])
    return y.astype(jnp.bfloat16).astype(jnp.float32)    # final bf16 store (as kernel)


# ----------------------------------------------------------------------------
# Deterministic parameter init (shapes follow the PyTorch module __init__)
# ----------------------------------------------------------------------------
def make_params(key, num_features, block_channels, kernel_width):
    params = []
    for ch in block_channels:
        assert num_features % ch == 0
        key, *ks = jax.random.split(key, 13)
        params.append({
            "conv_w": 0.1 * jax.random.normal(ks[0], (ch, ch, 1, kernel_width), jnp.float32),
            "conv_b": 0.1 * jax.random.normal(ks[1], (ch,), jnp.float32),
            "ln1_g": 1.0 + 0.1 * jax.random.normal(ks[2], (num_features,), jnp.float32),
            "ln1_b": 0.1 * jax.random.normal(ks[3], (num_features,), jnp.float32),
            "fc_w1": 0.1 * jax.random.normal(ks[4], (num_features, num_features), jnp.float32),
            "fc_b1": 0.1 * jax.random.normal(ks[5], (num_features,), jnp.float32),
            "fc_w2": 0.1 * jax.random.normal(ks[6], (num_features, num_features), jnp.float32),
            "fc_b2": 0.1 * jax.random.normal(ks[7], (num_features,), jnp.float32),
            "ln2_g": 1.0 + 0.1 * jax.random.normal(ks[8], (num_features,), jnp.float32),
            "ln2_b": 0.1 * jax.random.normal(ks[9], (num_features,), jnp.float32),
        })
    return params


if __name__ == "__main__":
    num_features = 32           # C = channels * width
    block_channels = (4, 8)     # 2 (conv + fc) block pairs
    kernel_width = 5            # odd -> T preserved; even widths also supported
    T, N = 8, 2                 # (T, N, C) sequence input

    key = jax.random.PRNGKey(0)
    key, pkey, xkey = jax.random.split(key, 3)
    params = make_params(pkey, num_features, block_channels, kernel_width)
    x = jax.random.normal(xkey, (T, N, num_features), jnp.float32)

    prepped = prepare_params(params, kernel_width)      # one-time re-layout
    encoder = jax.jit(functools.partial(tds_conv_encoder_pallas,
                                        kernel_width=kernel_width))
    out = jax.block_until_ready(encoder(x, prepped))

    ref = jax.block_until_ready(tds_conv_encoder_ref(x, params, kernel_width))
    # Both sides use bf16 matmul inputs + bf16 inter-block activations with f32
    # accumulation / LayerNorm math; tolerance is at bf16-rounding level.
    np.testing.assert_allclose(np.asarray(out), np.asarray(ref),
                               rtol=1e-2, atol=2e-2)

    print("KERNEL_OK")
</pallas_src>

<mosaic_0001>
module attributes {stable_mosaic.version = 11 : i64} {
  func.func @_tds_block_pair_kernel(%arg0: i32, %arg1: memref<32x32xbf16, #tpu.memory_space<vmem>>, %arg2: memref<32x32xbf16, #tpu.memory_space<vmem>>, %arg3: memref<5x32x32xbf16, #tpu.memory_space<vmem>>, %arg4: memref<32x32xbf16, #tpu.memory_space<vmem>>, %arg5: memref<32x32xbf16, #tpu.memory_space<vmem>>, %arg6: memref<8x32xf32, #tpu.memory_space<vmem>>, %arg7: memref<32x32xbf16, #tpu.memory_space<vmem>>, %arg8: memref<64x32xbf16, #tpu.memory_space<vmem>>) attributes {dimension_semantics = [#tpu.dimension_semantics<parallel>], iteration_bounds = array<i64: 2>, scalar_prefetch = 0 : i64, scratch_operands = 1 : i64, tpu.core_type = #tpu.core_type<tc>, window_params = [{transform_indices = @transform_0, window_bounds = array<i64: 32, 32>}, {transform_indices = @transform_1, window_bounds = array<i64: 32, 32>}, {pipeline_mode = #tpu.pipeline_mode<synchronous>, transform_indices = @transform_2, window_bounds = array<i64: 5, 32, 32>}, {pipeline_mode = #tpu.pipeline_mode<synchronous>, transform_indices = @transform_3, window_bounds = array<i64: 32, 32>}, {pipeline_mode = #tpu.pipeline_mode<synchronous>, transform_indices = @transform_4, window_bounds = array<i64: 32, 32>}, {pipeline_mode = #tpu.pipeline_mode<synchronous>, transform_indices = @transform_5, window_bounds = array<i64: 8, 32>}, {transform_indices = @transform_6, window_bounds = array<i64: 32, 32>}]} {
    %c0 = arith.constant 0 : index
    %c0_0 = arith.constant 0 : index
    %0 = vector.load %arg1[%c0, %c0_0] : memref<32x32xbf16, #tpu.memory_space<vmem>>, vector<32x32xbf16>
    %c0_1 = arith.constant 0 : index
    %c0_2 = arith.constant 0 : index
    %1 = vector.load %arg8[%c0_1, %c0_2] : memref<64x32xbf16, #tpu.memory_space<vmem>>, vector<32x32xbf16>
    tpu.vector_store %arg8[%c0_1, %c0_2], %0 {strides = array<i32>} : memref<64x32xbf16, #tpu.memory_space<vmem>>, vector<32x32xbf16>,
    %c0_3 = arith.constant 0 : index
    %c0_4 = arith.constant 0 : index
    %2 = vector.load %arg2[%c0_3, %c0_4] : memref<32x32xbf16, #tpu.memory_space<vmem>>, vector<32x32xbf16>
    %c32 = arith.constant 32 : index
    %c0_5 = arith.constant 0 : index
    %3 = vector.load %arg8[%c32, %c0_5] : memref<64x32xbf16, #tpu.memory_space<vmem>>, vector<32x32xbf16>
    tpu.vector_store %arg8[%c32, %c0_5], %2 {strides = array<i32>} : memref<64x32xbf16, #tpu.memory_space<vmem>>, vector<32x32xbf16>,
    %c0_6 = arith.constant 0 : index
    %c0_7 = arith.constant 0 : index
    %4 = vector.load %arg6[%c0_6, %c0_7] : memref<8x32xf32, #tpu.memory_space<vmem>>, vector<8x32xf32>
    %5 = vector.extract_strided_slice %4 {offsets = [0, 0], sizes = [1, 32], strides = [1, 1]} : vector<8x32xf32> to vector<1x32xf32>
    %6 = vector.extract_strided_slice %4 {offsets = [1, 0], sizes = [1, 32], strides = [1, 1]} : vector<8x32xf32> to vector<1x32xf32>
    %7 = vector.extract_strided_slice %4 {offsets = [2, 0], sizes = [1, 32], strides = [1, 1]} : vector<8x32xf32> to vector<1x32xf32>
    %8 = vector.extract_strided_slice %4 {offsets = [3, 0], sizes = [1, 32], strides = [1, 1]} : vector<8x32xf32> to vector<1x32xf32>
    %9 = vector.extract_strided_slice %4 {offsets = [4, 0], sizes = [1, 32], strides = [1, 1]} : vector<8x32xf32> to vector<1x32xf32>
    %10 = vector.extract_strided_slice %4 {offsets = [5, 0], sizes = [1, 32], strides = [1, 1]} : vector<8x32xf32> to vector<1x32xf32>
    %11 = vector.extract_strided_slice %4 {offsets = [6, 0], sizes = [1, 32], strides = [1, 1]} : vector<8x32xf32> to vector<1x32xf32>
    %c0_8 = arith.constant 0 : index
    %c0_9 = arith.constant 0 : index
    %12 = vector.load %arg8[%c0_8, %c0_9] : memref<64x32xbf16, #tpu.memory_space<vmem>>, vector<32x32xbf16>
    %c0_10 = arith.constant 0 : index
    %c0_11 = arith.constant 0 : index
    %c0_12 = arith.constant 0 : index
    %13 = vector.load %arg3[%c0_10, %c0_11, %c0_12] : memref<5x32x32xbf16, #tpu.memory_space<vmem>>, vector<1x32x32xbf16>
    %14 = vector.shape_cast %13 : vector<1x32x32xbf16> to vector<32x32xbf16>
    %cst = arith.constant dense<0.000000e+00> : vector<32x32xf32>
    %15 = tpu.matmul %12, %14, %cst {dimension_numbers = #tpu.dot_dimension_numbers<[1], [0], [0], [1], [0, 0, 1, 1], [], []>} : vector<32x32xbf16>, vector<32x32xbf16>, vector<32x32xf32> -> vector<32x32xf32>
    %c8 = arith.constant 8 : index
    %c0_13 = arith.constant 0 : index
    %16 = vector.load %arg8[%c8, %c0_13] : memref<64x32xbf16, #tpu.memory_space<vmem>>, vector<32x32xbf16>
    %c1 = arith.constant 1 : index
    %c0_14 = arith.constant 0 : index
    %c0_15 = arith.constant 0 : index
    %17 = vector.load %arg3[%c1, %c0_14, %c0_15] : memref<5x32x32xbf16, #tpu.memory_space<vmem>>, vector<1x32x32xbf16>
    %18 = vector.shape_cast %17 : vector<1x32x32xbf16> to vector<32x32xbf16>
    %cst_16 = arith.constant dense<0.000000e+00> : vector<32x32xf32>
    %19 = tpu.matmul %16, %18, %cst_16 {dimension_numbers = #tpu.dot_dimension_numbers<[1], [0], [0], [1], [0, 0, 1, 1], [], []>} : vector<32x32xbf16>, vector<32x32xbf16>, vector<32x32xf32> -> vector<32x32xf32>
    %20 = arith.addf %15, %19 : vector<32x32xf32>
    %c16 = arith.constant 16 : index
    %c0_17 = arith.constant 0 : index
    %21 = vector.load %arg8[%c16, %c0_17] : memref<64x32xbf16, #tpu.memory_space<vmem>>, vector<32x32xbf16>
    %c2 = arith.constant 2 : index
    %c0_18 = arith.constant 0 : index
    %c0_19 = arith.constant 0 : index
    %22 = vector.load %arg3[%c2, %c0_18, %c0_19] : memref<5x32x32xbf16, #tpu.memory_space<vmem>>, vector<1x32x32xbf16>
    %23 = vector.shape_cast %22 : vector<1x32x32xbf16> to vector<32x32xbf16>
    %cst_20 = arith.constant dense<0.000000e+00> : vector<32x32xf32>
    %24 = tpu.matmul %21, %23, %cst_20 {dimension_numbers = #tpu.dot_dimension_numbers<[1], [0], [0], [1], [0, 0, 1, 1], [], []>} : vector<32x32xbf16>, vector<32x32xbf16>, vector<32x32xf32> -> vector<32x32xf32>
    %25 = arith.addf %20, %24 : vector<32x32xf32>
    %c24 = arith.constant 24 : index
    %c0_21 = arith.constant 0 : index
    %26 = vector.load %arg8[%c24, %c0_21] : memref<64x32xbf16, #tpu.memory_space<vmem>>, vector<32x32xbf16>
    %c3 = arith.constant 3 : index
    %c0_22 = arith.constant 0 : index
    %c0_23 = arith.constant 0 : index
    %27 = vector.load %arg3[%c3, %c0_22, %c0_23] : memref<5x32x32xbf16, #tpu.memory_space<vmem>>, vector<1x32x32xbf16>
    %28 = vector.shape_cast %27 : vector<1x32x32xbf16> to vector<32x32xbf16>
    %cst_24 = arith.constant dense<0.000000e+00> : vector<32x32xf32>
    %29 = tpu.matmul %26, %28, %cst_24 {dimension_numbers = #tpu.dot_dimension_numbers<[1], [0], [0], [1], [0, 0, 1, 1], [], []>} : vector<32x32xbf16>, vector<32x32xbf16>, vector<32x32xf32> -> vector<32x32xf32>
    %30 = arith.addf %25, %29 : vector<32x32xf32>
    %c32_25 = arith.constant 32 : index
    %c0_26 = arith.constant 0 : index
    %31 = vector.load %arg8[%c32_25, %c0_26] : memref<64x32xbf16, #tpu.memory_space<vmem>>, vector<32x32xbf16>
    %c4 = arith.constant 4 : index
    %c0_27 = arith.constant 0 : index
    %c0_28 = arith.constant 0 : index
    %32 = vector.load %arg3[%c4, %c0_27, %c0_28] : memref<5x32x32xbf16, #tpu.memory_space<vmem>>, vector<1x32x32xbf16>
    %33 = vector.shape_cast %32 : vector<1x32x32xbf16> to vector<32x32xbf16>
    %cst_29 = arith.constant dense<0.000000e+00> : vector<32x32xf32>
    %34 = tpu.matmul %31, %33, %cst_29 {dimension_numbers = #tpu.dot_dimension_numbers<[1], [0], [0], [1], [0, 0, 1, 1], [], []>} : vector<32x32xbf16>, vector<32x32xbf16>, vector<32x32xf32> -> vector<32x32xf32>
    %35 = arith.addf %30, %34 : vector<32x32xf32>
    %36 = vector.broadcast %5 : vector<1x32xf32> to vector<32x32xf32>
    %37 = arith.addf %35, %36 : vector<32x32xf32>
    %cst_30 = arith.constant 0.000000e+00 : f32
    %38 = vector.broadcast %cst_30 : f32 to vector<32x32xf32>
    %39 = arith.maximumf %37, %38 : vector<32x32xf32>
    %c16_31 = arith.constant 16 : index
    %c0_32 = arith.constant 0 : index
    %40 = vector.load %arg8[%c16_31, %c0_32] : memref<64x32xbf16, #tpu.memory_space<vmem>>, vector<32x32xbf16>
    %41 = arith.extf %40 : vector<32x32xbf16> to vector<32x32xf32>
    %42 = arith.addf %39, %41 : vector<32x32xf32>
    %cst_33 = arith.constant dense<0.000000e+00> : vector<32xf32>
    %43 = vector.multi_reduction <add>, %42, %cst_33 [1] : vector<32x32xf32> to vector<32xf32>
    %44 = vector.shape_cast %43 : vector<32xf32> to vector<32x1xf32>
    %cst_34 = arith.constant 3.200000e+01 : f32
    %45 = vector.broadcast %cst_34 : f32 to vector<32x1xf32>
    %46 = arith.divf %44, %45 : vector<32x1xf32>
    %47 = vector.broadcast %46 : vector<32x1xf32> to vector<32x32xf32>
    %48 = arith.subf %42, %47 : vector<32x32xf32>
    %49 = arith.mulf %48, %48 : vector<32x32xf32>
    %cst_35 = arith.constant dense<0.000000e+00> : vector<32xf32>
    %50 = vector.multi_reduction <add>, %49, %cst_35 [1] : vector<32x32xf32> to vector<32xf32>
    %51 = vector.shape_cast %50 : vector<32xf32> to vector<32x1xf32>
    %cst_36 = arith.constant 3.200000e+01 : f32
    %52 = vector.broadcast %cst_36 : f32 to vector<32x1xf32>
    %53 = arith.divf %51, %52 : vector<32x1xf32>
    %cst_37 = arith.constant 9.99999974E-6 : f32
    %54 = vector.broadcast %cst_37 : f32 to vector<32x1xf32>
    %55 = arith.addf %53, %54 : vector<32x1xf32>
    %56 = math.rsqrt %55 : vector<32x1xf32>
    %57 = vector.broadcast %56 : vector<32x1xf32> to vector<32x32xf32>
    %58 = arith.mulf %48, %57 : vector<32x32xf32>
    %59 = vector.broadcast %6 : vector<1x32xf32> to vector<32x32xf32>
    %60 = arith.mulf %58, %59 : vector<32x32xf32>
    %61 = vector.broadcast %7 : vector<1x32xf32> to vector<32x32xf32>
    %62 = arith.addf %60, %61 : vector<32x32xf32>
    %63 = arith.truncf %62 : vector<32x32xf32> to vector<32x32xbf16>
    %c0_38 = arith.constant 0 : index
    %c0_39 = arith.constant 0 : index
    %64 = vector.load %arg4[%c0_38, %c0_39] : memref<32x32xbf16, #tpu.memory_space<vmem>>, vector<32x32xbf16>
    %cst_40 = arith.constant dense<0.000000e+00> : vector<32x32xf32>
    %65 = tpu.matmul %63, %64, %cst_40 {dimension_numbers = #tpu.dot_dimension_numbers<[1], [0], [0], [1], [0, 0, 1, 1], [], []>} : vector<32x32xbf16>, vector<32x32xbf16>, vector<32x32xf32> -> vector<32x32xf32>
    %66 = vector.broadcast %8 : vector<1x32xf32> to vector<32x32xf32>
    %67 = arith.addf %65, %66 : vector<32x32xf32>
    %cst_41 = arith.constant 0.000000e+00 : f32
    %68 = vector.broadcast %cst_41 : f32 to vector<32x32xf32>
    %69 = arith.maximumf %67, %68 : vector<32x32xf32>
    %70 = arith.truncf %69 : vector<32x32xf32> to vector<32x32xbf16>
    %c0_42 = arith.constant 0 : index
    %c0_43 = arith.constant 0 : index
    %71 = vector.load %arg5[%c0_42, %c0_43] : memref<32x32xbf16, #tpu.memory_space<vmem>>, vector<32x32xbf16>
    %cst_44 = arith.constant dense<0.000000e+00> : vector<32x32xf32>
    %72 = tpu.matmul %70, %71, %cst_44 {dimension_numbers = #tpu.dot_dimension_numbers<[1], [0], [0], [1], [0, 0, 1, 1], [], []>} : vector<32x32xbf16>, vector<32x32xbf16>, vector<32x32xf32> -> vector<32x32xf32>
    %73 = vector.broadcast %9 : vector<1x32xf32> to vector<32x32xf32>
    %74 = arith.addf %72, %73 : vector<32x32xf32>
    %75 = arith.addf %74, %62 : vector<32x32xf32>
    %cst_45 = arith.constant dense<0.000000e+00> : vector<32xf32>
    %76 = vector.multi_reduction <add>, %75, %cst_45 [1] : vector<32x32xf32> to vector<32xf32>
    %77 = vector.shape_cast %76 : vector<32xf32> to vector<32x1xf32>
    %cst_46 = arith.constant 3.200000e+01 : f32
    %78 = vector.broadcast %cst_46 : f32 to vector<32x1xf32>
    %79 = arith.divf %77, %78 : vector<32x1xf32>
    %80 = vector.broadcast %79 : vector<32x1xf32> to vector<32x32xf32>
    %81 = arith.subf %75, %80 : vector<32x32xf32>
    %82 = arith.mulf %81, %81 : vector<32x32xf32>
    %cst_47 = arith.constant dense<0.000000e+00> : vector<32xf32>
    %83 = vector.multi_reduction <add>, %82, %cst_47 [1] : vector<32x32xf32> to vector<32xf32>
    %84 = vector.shape_cast %83 : vector<32xf32> to vector<32x1xf32>
    %cst_48 = arith.constant 3.200000e+01 : f32
    %85 = vector.broadcast %cst_48 : f32 to vector<32x1xf32>
    %86 = arith.divf %84, %85 : vector<32x1xf32>
    %cst_49 = arith.constant 9.99999974E-6 : f32
    %87 = vector.broadcast %cst_49 : f32 to vector<32x1xf32>
    %88 = arith.addf %86, %87 : vector<32x1xf32>
    %89 = math.rsqrt %88 : vector<32x1xf32>
    %90 = vector.broadcast %89 : vector<32x1xf32> to vector<32x32xf32>
    %91 = arith.mulf %81, %90 : vector<32x32xf32>
    %92 = vector.broadcast %10 : vector<1x32xf32> to vector<32x32xf32>
    %93 = arith.mulf %91, %92 : vector<32x32xf32>
    %94 = vector.broadcast %11 : vector<1x32xf32> to vector<32x32xf32>
    %95 = arith.addf %93, %94 : vector<32x32xf32>
    %96 = arith.truncf %95 : vector<32x32xf32> to vector<32x32xbf16>
    %c0_50 = arith.constant 0 : index
    %c0_51 = arith.constant 0 : index
    %97 = vector.load %arg7[%c0_50, %c0_51] : memref<32x32xbf16, #tpu.memory_space<vmem>>, vector<32x32xbf16>
    tpu.vector_store %arg7[%c0_50, %c0_51], %96 {strides = array<i32>} : memref<32x32xbf16, #tpu.memory_space<vmem>>, vector<32x32xbf16>,
    return
  }
  func.func @transform_0(%arg0: i32) -> (i32, i32) {
    %c0_i32 = arith.constant 0 : i32
    %c0_i32_0 = arith.constant 0 : i32
    return %arg0, %c0_i32 : i32, i32
  }
  func.func @transform_1(%arg0: i32) -> (i32, i32) {
    %c1_i32 = arith.constant 1 : i32
    %0 = arith.addi %arg0, %c1_i32 : i32
    %c1_i32_0 = arith.constant 1 : i32
    %1 = arith.muli %0, %c1_i32_0 : i32
    %c0_i32 = arith.constant 0 : i32
    %c0_i32_1 = arith.constant 0 : i32
    return %1, %c0_i32 : i32, i32
  }
  func.func @transform_2(%arg0: i32) -> (i32, i32, i32) {
    %c0_i32 = arith.constant 0 : i32
    %c0_i32_0 = arith.constant 0 : i32
    %c0_i32_1 = arith.constant 0 : i32
    %c0_i32_2 = arith.constant 0 : i32
    return %c0_i32, %c0_i32_0, %c0_i32_1 : i32, i32, i32
  }
  func.func @transform_3(%arg0: i32) -> (i32, i32) {
    %c0_i32 = arith.constant 0 : i32
    %c0_i32_0 = arith.constant 0 : i32
    %c0_i32_1 = arith.constant 0 : i32
    return %c0_i32, %c0_i32_0 : i32, i32
  }
  func.func @transform_4(%arg0: i32) -> (i32, i32) {
    %c0_i32 = arith.constant 0 : i32
    %c0_i32_0 = arith.constant 0 : i32
    %c0_i32_1 = arith.constant 0 : i32
    return %c0_i32, %c0_i32_0 : i32, i32
  }
  func.func @transform_5(%arg0: i32) -> (i32, i32) {
    %c0_i32 = arith.constant 0 : i32
    %c0_i32_0 = arith.constant 0 : i32
    %c0_i32_1 = arith.constant 0 : i32
    return %c0_i32, %c0_i32_0 : i32, i32
  }
  func.func @transform_6(%arg0: i32) -> (i32, i32) {
    %c0_i32 = arith.constant 0 : i32
    %c0_i32_0 = arith.constant 0 : i32
    return %arg0, %c0_i32 : i32, i32
  }
}

module attributes {stable_mosaic.version = 11 : i64} {
  func.func @_tds_block_pair_kernel(%arg0: i32, %arg1: memref<32x32xbf16, #tpu.memory_space<vmem>>, %arg2: memref<32x32xbf16, #tpu.memory_space<vmem>>, %arg3: memref<5x32x32xbf16, #tpu.memory_space<vmem>>, %arg4: memref<32x32xbf16, #tpu.memory_space<vmem>>, %arg5: memref<32x32xbf16, #tpu.memory_space<vmem>>, %arg6: memref<8x32xf32, #tpu.memory_space<vmem>>, %arg7: memref<32x32xbf16, #tpu.memory_space<vmem>>, %arg8: memref<64x32xbf16, #tpu.memory_space<vmem>>) attributes {dimension_semantics = [#tpu.dimension_semantics<parallel>], iteration_bounds = array<i64: 2>, scalar_prefetch = 0 : i64, scratch_operands = 1 : i64, tpu.core_type = #tpu.core_type<tc>, window_params = [{transform_indices = @transform_0, window_bounds = array<i64: 32, 32>}, {transform_indices = @transform_1, window_bounds = array<i64: 32, 32>}, {pipeline_mode = #tpu.pipeline_mode<synchronous>, transform_indices = @transform_2, window_bounds = array<i64: 5, 32, 32>}, {pipeline_mode = #tpu.pipeline_mode<synchronous>, transform_indices = @transform_3, window_bounds = array<i64: 32, 32>}, {pipeline_mode = #tpu.pipeline_mode<synchronous>, transform_indices = @transform_4, window_bounds = array<i64: 32, 32>}, {pipeline_mode = #tpu.pipeline_mode<synchronous>, transform_indices = @transform_5, window_bounds = array<i64: 8, 32>}, {transform_indices = @transform_6, window_bounds = array<i64: 32, 32>}]} {
    %c0 = arith.constant 0 : index
    %c0_0 = arith.constant 0 : index
    %0 = vector.load %arg1[%c0, %c0_0] : memref<32x32xbf16, #tpu.memory_space<vmem>>, vector<32x32xbf16>
    %c0_1 = arith.constant 0 : index
    %c0_2 = arith.constant 0 : index
    %1 = vector.load %arg8[%c0_1, %c0_2] : memref<64x32xbf16, #tpu.memory_space<vmem>>, vector<32x32xbf16>
    tpu.vector_store %arg8[%c0_1, %c0_2], %0 {strides = array<i32>} : memref<64x32xbf16, #tpu.memory_space<vmem>>, vector<32x32xbf16>,
    %c0_3 = arith.constant 0 : index
    %c0_4 = arith.constant 0 : index
    %2 = vector.load %arg2[%c0_3, %c0_4] : memref<32x32xbf16, #tpu.memory_space<vmem>>, vector<32x32xbf16>
    %c32 = arith.constant 32 : index
    %c0_5 = arith.constant 0 : index
    %3 = vector.load %arg8[%c32, %c0_5] : memref<64x32xbf16, #tpu.memory_space<vmem>>, vector<32x32xbf16>
    tpu.vector_store %arg8[%c32, %c0_5], %2 {strides = array<i32>} : memref<64x32xbf16, #tpu.memory_space<vmem>>, vector<32x32xbf16>,
    %c0_6 = arith.constant 0 : index
    %c0_7 = arith.constant 0 : index
    %4 = vector.load %arg6[%c0_6, %c0_7] : memref<8x32xf32, #tpu.memory_space<vmem>>, vector<8x32xf32>
    %5 = vector.extract_strided_slice %4 {offsets = [0, 0], sizes = [1, 32], strides = [1, 1]} : vector<8x32xf32> to vector<1x32xf32>
    %6 = vector.extract_strided_slice %4 {offsets = [1, 0], sizes = [1, 32], strides = [1, 1]} : vector<8x32xf32> to vector<1x32xf32>
    %7 = vector.extract_strided_slice %4 {offsets = [2, 0], sizes = [1, 32], strides = [1, 1]} : vector<8x32xf32> to vector<1x32xf32>
    %8 = vector.extract_strided_slice %4 {offsets = [3, 0], sizes = [1, 32], strides = [1, 1]} : vector<8x32xf32> to vector<1x32xf32>
    %9 = vector.extract_strided_slice %4 {offsets = [4, 0], sizes = [1, 32], strides = [1, 1]} : vector<8x32xf32> to vector<1x32xf32>
    %10 = vector.extract_strided_slice %4 {offsets = [5, 0], sizes = [1, 32], strides = [1, 1]} : vector<8x32xf32> to vector<1x32xf32>
    %11 = vector.extract_strided_slice %4 {offsets = [6, 0], sizes = [1, 32], strides = [1, 1]} : vector<8x32xf32> to vector<1x32xf32>
    %c0_8 = arith.constant 0 : index
    %c0_9 = arith.constant 0 : index
    %12 = vector.load %arg8[%c0_8, %c0_9] : memref<64x32xbf16, #tpu.memory_space<vmem>>, vector<32x32xbf16>
    %c0_10 = arith.constant 0 : index
    %c0_11 = arith.constant 0 : index
    %c0_12 = arith.constant 0 : index
    %13 = vector.load %arg3[%c0_10, %c0_11, %c0_12] : memref<5x32x32xbf16, #tpu.memory_space<vmem>>, vector<1x32x32xbf16>
    %14 = vector.shape_cast %13 : vector<1x32x32xbf16> to vector<32x32xbf16>
    %cst = arith.constant dense<0.000000e+00> : vector<32x32xf32>
    %15 = tpu.matmul %12, %14, %cst {dimension_numbers = #tpu.dot_dimension_numbers<[1], [0], [0], [1], [0, 0, 1, 1], [], []>} : vector<32x32xbf16>, vector<32x32xbf16>, vector<32x32xf32> -> vector<32x32xf32>
    %c8 = arith.constant 8 : index
    %c0_13 = arith.constant 0 : index
    %16 = vector.load %arg8[%c8, %c0_13] : memref<64x32xbf16, #tpu.memory_space<vmem>>, vector<32x32xbf16>
    %c1 = arith.constant 1 : index
    %c0_14 = arith.constant 0 : index
    %c0_15 = arith.constant 0 : index
    %17 = vector.load %arg3[%c1, %c0_14, %c0_15] : memref<5x32x32xbf16, #tpu.memory_space<vmem>>, vector<1x32x32xbf16>
    %18 = vector.shape_cast %17 : vector<1x32x32xbf16> to vector<32x32xbf16>
    %cst_16 = arith.constant dense<0.000000e+00> : vector<32x32xf32>
    %19 = tpu.matmul %16, %18, %cst_16 {dimension_numbers = #tpu.dot_dimension_numbers<[1], [0], [0], [1], [0, 0, 1, 1], [], []>} : vector<32x32xbf16>, vector<32x32xbf16>, vector<32x32xf32> -> vector<32x32xf32>
    %20 = arith.addf %15, %19 : vector<32x32xf32>
    %c16 = arith.constant 16 : index
    %c0_17 = arith.constant 0 : index
    %21 = vector.load %arg8[%c16, %c0_17] : memref<64x32xbf16, #tpu.memory_space<vmem>>, vector<32x32xbf16>
    %c2 = arith.constant 2 : index
    %c0_18 = arith.constant 0 : index
    %c0_19 = arith.constant 0 : index
    %22 = vector.load %arg3[%c2, %c0_18, %c0_19] : memref<5x32x32xbf16, #tpu.memory_space<vmem>>, vector<1x32x32xbf16>
    %23 = vector.shape_cast %22 : vector<1x32x32xbf16> to vector<32x32xbf16>
    %cst_20 = arith.constant dense<0.000000e+00> : vector<32x32xf32>
    %24 = tpu.matmul %21, %23, %cst_20 {dimension_numbers = #tpu.dot_dimension_numbers<[1], [0], [0], [1], [0, 0, 1, 1], [], []>} : vector<32x32xbf16>, vector<32x32xbf16>, vector<32x32xf32> -> vector<32x32xf32>
    %25 = arith.addf %20, %24 : vector<32x32xf32>
    %c24 = arith.constant 24 : index
    %c0_21 = arith.constant 0 : index
    %26 = vector.load %arg8[%c24, %c0_21] : memref<64x32xbf16, #tpu.memory_space<vmem>>, vector<32x32xbf16>
    %c3 = arith.constant 3 : index
    %c0_22 = arith.constant 0 : index
    %c0_23 = arith.constant 0 : index
    %27 = vector.load %arg3[%c3, %c0_22, %c0_23] : memref<5x32x32xbf16, #tpu.memory_space<vmem>>, vector<1x32x32xbf16>
    %28 = vector.shape_cast %27 : vector<1x32x32xbf16> to vector<32x32xbf16>
    %cst_24 = arith.constant dense<0.000000e+00> : vector<32x32xf32>
    %29 = tpu.matmul %26, %28, %cst_24 {dimension_numbers = #tpu.dot_dimension_numbers<[1], [0], [0], [1], [0, 0, 1, 1], [], []>} : vector<32x32xbf16>, vector<32x32xbf16>, vector<32x32xf32> -> vector<32x32xf32>
    %30 = arith.addf %25, %29 : vector<32x32xf32>
    %c32_25 = arith.constant 32 : index
    %c0_26 = arith.constant 0 : index
    %31 = vector.load %arg8[%c32_25, %c0_26] : memref<64x32xbf16, #tpu.memory_space<vmem>>, vector<32x32xbf16>
    %c4 = arith.constant 4 : index
    %c0_27 = arith.constant 0 : index
    %c0_28 = arith.constant 0 : index
    %32 = vector.load %arg3[%c4, %c0_27, %c0_28] : memref<5x32x32xbf16, #tpu.memory_space<vmem>>, vector<1x32x32xbf16>
    %33 = vector.shape_cast %32 : vector<1x32x32xbf16> to vector<32x32xbf16>
    %cst_29 = arith.constant dense<0.000000e+00> : vector<32x32xf32>
    %34 = tpu.matmul %31, %33, %cst_29 {dimension_numbers = #tpu.dot_dimension_numbers<[1], [0], [0], [1], [0, 0, 1, 1], [], []>} : vector<32x32xbf16>, vector<32x32xbf16>, vector<32x32xf32> -> vector<32x32xf32>
    %35 = arith.addf %30, %34 : vector<32x32xf32>
    %36 = vector.broadcast %5 : vector<1x32xf32> to vector<32x32xf32>
    %37 = arith.addf %35, %36 : vector<32x32xf32>
    %cst_30 = arith.constant 0.000000e+00 : f32
    %38 = vector.broadcast %cst_30 : f32 to vector<32x32xf32>
    %39 = arith.maximumf %37, %38 : vector<32x32xf32>
    %c16_31 = arith.constant 16 : index
    %c0_32 = arith.constant 0 : index
    %40 = vector.load %arg8[%c16_31, %c0_32] : memref<64x32xbf16, #tpu.memory_space<vmem>>, vector<32x32xbf16>
    %41 = arith.extf %40 : vector<32x32xbf16> to vector<32x32xf32>
    %42 = arith.addf %39, %41 : vector<32x32xf32>
    %cst_33 = arith.constant dense<0.000000e+00> : vector<32xf32>
    %43 = vector.multi_reduction <add>, %42, %cst_33 [1] : vector<32x32xf32> to vector<32xf32>
    %44 = vector.shape_cast %43 : vector<32xf32> to vector<32x1xf32>
    %cst_34 = arith.constant 3.200000e+01 : f32
    %45 = vector.broadcast %cst_34 : f32 to vector<32x1xf32>
    %46 = arith.divf %44, %45 : vector<32x1xf32>
    %47 = vector.broadcast %46 : vector<32x1xf32> to vector<32x32xf32>
    %48 = arith.subf %42, %47 : vector<32x32xf32>
    %49 = arith.mulf %48, %48 : vector<32x32xf32>
    %cst_35 = arith.constant dense<0.000000e+00> : vector<32xf32>
    %50 = vector.multi_reduction <add>, %49, %cst_35 [1] : vector<32x32xf32> to vector<32xf32>
    %51 = vector.shape_cast %50 : vector<32xf32> to vector<32x1xf32>
    %cst_36 = arith.constant 3.200000e+01 : f32
    %52 = vector.broadcast %cst_36 : f32 to vector<32x1xf32>
    %53 = arith.divf %51, %52 : vector<32x1xf32>
    %cst_37 = arith.constant 9.99999974E-6 : f32
    %54 = vector.broadcast %cst_37 : f32 to vector<32x1xf32>
    %55 = arith.addf %53, %54 : vector<32x1xf32>
    %56 = math.rsqrt %55 : vector<32x1xf32>
    %57 = vector.broadcast %56 : vector<32x1xf32> to vector<32x32xf32>
    %58 = arith.mulf %48, %57 : vector<32x32xf32>
    %59 = vector.broadcast %6 : vector<1x32xf32> to vector<32x32xf32>
    %60 = arith.mulf %58, %59 : vector<32x32xf32>
    %61 = vector.broadcast %7 : vector<1x32xf32> to vector<32x32xf32>
    %62 = arith.addf %60, %61 : vector<32x32xf32>
    %63 = arith.truncf %62 : vector<32x32xf32> to vector<32x32xbf16>
    %c0_38 = arith.constant 0 : index
    %c0_39 = arith.constant 0 : index
    %64 = vector.load %arg4[%c0_38, %c0_39] : memref<32x32xbf16, #tpu.memory_space<vmem>>, vector<32x32xbf16>
    %cst_40 = arith.constant dense<0.000000e+00> : vector<32x32xf32>
    %65 = tpu.matmul %63, %64, %cst_40 {dimension_numbers = #tpu.dot_dimension_numbers<[1], [0], [0], [1], [0, 0, 1, 1], [], []>} : vector<32x32xbf16>, vector<32x32xbf16>, vector<32x32xf32> -> vector<32x32xf32>
    %66 = vector.broadcast %8 : vector<1x32xf32> to vector<32x32xf32>
    %67 = arith.addf %65, %66 : vector<32x32xf32>
    %cst_41 = arith.constant 0.000000e+00 : f32
    %68 = vector.broadcast %cst_41 : f32 to vector<32x32xf32>
    %69 = arith.maximumf %67, %68 : vector<32x32xf32>
    %70 = arith.truncf %69 : vector<32x32xf32> to vector<32x32xbf16>
    %c0_42 = arith.constant 0 : index
    %c0_43 = arith.constant 0 : index
    %71 = vector.load %arg5[%c0_42, %c0_43] : memref<32x32xbf16, #tpu.memory_space<vmem>>, vector<32x32xbf16>
    %cst_44 = arith.constant dense<0.000000e+00> : vector<32x32xf32>
    %72 = tpu.matmul %70, %71, %cst_44 {dimension_numbers = #tpu.dot_dimension_numbers<[1], [0], [0], [1], [0, 0, 1, 1], [], []>} : vector<32x32xbf16>, vector<32x32xbf16>, vector<32x32xf32> -> vector<32x32xf32>
    %73 = vector.broadcast %9 : vector<1x32xf32> to vector<32x32xf32>
    %74 = arith.addf %72, %73 : vector<32x32xf32>
    %75 = arith.addf %74, %62 : vector<32x32xf32>
    %cst_45 = arith.constant dense<0.000000e+00> : vector<32xf32>
    %76 = vector.multi_reduction <add>, %75, %cst_45 [1] : vector<32x32xf32> to vector<32xf32>
    %77 = vector.shape_cast %76 : vector<32xf32> to vector<32x1xf32>
    %cst_46 = arith.constant 3.200000e+01 : f32
    %78 = vector.broadcast %cst_46 : f32 to vector<32x1xf32>
    %79 = arith.divf %77, %78 : vector<32x1xf32>
    %80 = vector.broadcast %79 : vector<32x1xf32> to vector<32x32xf32>
    %81 = arith.subf %75, %80 : vector<32x32xf32>
    %82 = arith.mulf %81, %81 : vector<32x32xf32>
    %cst_47 = arith.constant dense<0.000000e+00> : vector<32xf32>
    %83 = vector.multi_reduction <add>, %82, %cst_47 [1] : vector<32x32xf32> to vector<32xf32>
    %84 = vector.shape_cast %83 : vector<32xf32> to vector<32x1xf32>
    %cst_48 = arith.constant 3.200000e+01 : f32
    %85 = vector.broadcast %cst_48 : f32 to vector<32x1xf32>
    %86 = arith.divf %84, %85 : vector<32x1xf32>
    %cst_49 = arith.constant 9.99999974E-6 : f32
    %87 = vector.broadcast %cst_49 : f32 to vector<32x1xf32>
    %88 = arith.addf %86, %87 : vector<32x1xf32>
    %89 = math.rsqrt %88 : vector<32x1xf32>
    %90 = vector.broadcast %89 : vector<32x1xf32> to vector<32x32xf32>
    %91 = arith.mulf %81, %90 : vector<32x32xf32>
    %92 = vector.broadcast %10 : vector<1x32xf32> to vector<32x32xf32>
    %93 = arith.mulf %91, %92 : vector<32x32xf32>
    %94 = vector.broadcast %11 : vector<1x32xf32> to vector<32x32xf32>
    %95 = arith.addf %93, %94 : vector<32x32xf32>
    %96 = arith.truncf %95 : vector<32x32xf32> to vector<32x32xbf16>
    %c0_50 = arith.constant 0 : index
    %c0_51 = arith.constant 0 : index
    %97 = vector.load %arg7[%c0_50, %c0_51] : memref<32x32xbf16, #tpu.memory_space<vmem>>, vector<32x32xbf16>
    tpu.vector_store %arg7[%c0_50, %c0_51], %96 {strides = array<i32>} : memref<32x32xbf16, #tpu.memory_space<vmem>>, vector<32x32xbf16>,
    return
  }
  func.func @transform_0(%arg0: i32) -> (i32, i32) {
    %c0_i32 = arith.constant 0 : i32
    %c0_i32_0 = arith.constant 0 : i32
    return %arg0, %c0_i32 : i32, i32
  }
  func.func @transform_1(%arg0: i32) -> (i32, i32) {
    %c1_i32 = arith.constant 1 : i32
    %0 = arith.addi %arg0, %c1_i32 : i32
    %c1_i32_0 = arith.constant 1 : i32
    %1 = arith.muli %0, %c1_i32_0 : i32
    %c0_i32 = arith.constant 0 : i32
    %c0_i32_1 = arith.constant 0 : i32
    return %1, %c0_i32 : i32, i32
  }
  func.func @transform_2(%arg0: i32) -> (i32, i32, i32) {
    %c0_i32 = arith.constant 0 : i32
    %c0_i32_0 = arith.constant 0 : i32
    %c0_i32_1 = arith.constant 0 : i32
    %c0_i32_2 = arith.constant 0 : i32
    return %c0_i32, %c0_i32_0, %c0_i32_1 : i32, i32, i32
  }
  func.func @transform_3(%arg0: i32) -> (i32, i32) {
    %c0_i32 = arith.constant 0 : i32
    %c0_i32_0 = arith.constant 0 : i32
    %c0_i32_1 = arith.constant 0 : i32
    return %c0_i32, %c0_i32_0 : i32, i32
  }
  func.func @transform_4(%arg0: i32) -> (i32, i32) {
    %c0_i32 = arith.constant 0 : i32
    %c0_i32_0 = arith.constant 0 : i32
    %c0_i32_1 = arith.constant 0 : i32
    return %c0_i32, %c0_i32_0 : i32, i32
  }
  func.func @transform_5(%arg0: i32) -> (i32, i32) {
    %c0_i32 = arith.constant 0 : i32
    %c0_i32_0 = arith.constant 0 : i32
    %c0_i32_1 = arith.constant 0 : i32
    return %c0_i32, %c0_i32_0 : i32, i32
  }
  func.func @transform_6(%arg0: i32) -> (i32, i32) {
    %c0_i32 = arith.constant 0 : i32
    %c0_i32_0 = arith.constant 0 : i32
    return %arg0, %c0_i32 : i32, i32
  }
}

</mosaic_0001>

<bundles_post_ra>
// kernel: tds_conv_encoder_pallas.2
= control target key start
LH: loop header
LB: loop body
LE: loop exit
PB: predicated region body
PF: predicated region fallthrough
CT: control target
= control target key end

     0   :  { %11 = vsyncpa [#allocation4], 0  ;;  %s1730_s0 = inlined_call_operand.vmem [shape: bf16[96,32], index: 0, kind: input, shape index: {}, may-alias: {0,1}]   ;;  %s1731_s1 = inlined_call_operand.vmem [shape: bf16[96,32], index: 1, kind: input, shape index: {}, may-alias: {0,1}]   ;;  %s1732_s2 = inlined_call_operand.vmem [shape: bf16[5,32,32], index: 2, kind: input, shape index: {}]   ;;  %s1733_s3 = inlined_call_operand.hbm [shape: bf16[32,32], index: 3, kind: input, shape index: {}]   ;;  %s1734_s4 = inlined_call_operand.hbm [shape: bf16[32,32], index: 4, kind: input, shape index: {}]   ;;  %s1735_s5 = inlined_call_operand.vmem [shape: f32[8,32], index: 5, kind: input, shape index: {}]   ;;  %s1736_s6 = inlined_call_operand.vmem [shape: bf16[64,32], index: 6, kind: output, shape index: {}]  }
   0x1   :  { %12 = vsyncpa [#allocation6], 0  ;;  %s1528_s21 = smov 0  }
   0x2 LB: > { %s1177_s22 = sadd.s32 4294967295, %s1487_s21   ;;  %p1179_p0 = scmp.ge.s32.totalorder %s1487_s21, 1  ;;  %s1487_s21 = sphi %s1528_s21, %s18_s21  }
   0x3   : > { %p187_p1 = scmp.lt.s32.totalorder %s1487_s21, 3  ;;  %s1489_s23 = smov [#allocation3]  }
   0x4   : > { %s202_s24 = sshll.u32 %s1489_s23, 4  ;;  %p1542_p3 = scmp.eq.s32.totalorder %s1177_s22, 0  ;;  %s203_s24 = int_to_ptr.vmem [resolvable:$true] %s202_s24 }
   0x5   : > { %p1536_p2 = pnand %p1179_p0, %p187_p1  ;;  %s1490_s27 = smov [#allocation5]  }
   0x6   : > { %s1741_s26 = scalar_select %p1542_p3, 1, 0 }
   0x7   : > { %s1740_s25 = scalar_select %p1536_p2, 1, 0 }
   0x8   : > { %p1360_p4 = pneg %p1536_p2  ;;  %s215_s28 = sshll.u32 %s1490_s27, 4  ;;  %s1554_s28 = int_to_ptr.vmem [resolvable:$true] %s215_s28 }
   0x9   : > { %s1417_s8 = scalar_lea.hbm %s1733_s3, 256 }
   0xa   : > { %p1550_p5 = pnand %p1542_p3, %p1360_p4  ;;  %p1418_p6 = scmp.ne.s32.totalorder %s1733_s3, %s1417_s8 }
   0xb   : > { %p1424_p10 = scmp.lt.u32.totalorder %s1417_s8, %s1733_s3 }
   0xc   : > { %p1419_p7 = pneg %p1550_p5 }
   0xe   : > { %p1420_p8 = pnand %p1419_p7, %p1418_p6 }
  0x10   : > { %p1421_p9 = pneg %p1420_p8 }
  0x12   : > { %p1426_p11 = pnand %p1424_p10, %p1421_p9 }
  0x14   : > { %1429 = shalt.err (!%p1426_p11)
}
  0x15   : > { %s1430_s13 = scalar_lea.vmem %s203_s24, 256  ;;  %p1438_p1 = scmp.lt.s32.totalorder %s203_s24, %s203_s24 }
  0x16   : > { %p1431_p12 = scmp.ne.s32.totalorder %s203_s24, %s1430_s13  ;;  %p1439_p4 = scmp.lt.s32.totalorder %s1430_s13, %s1430_s13 }
  0x18   : > { %p1433_p13 = pnand %p1431_p12, %p1419_p7  ;;  %p1440_p3 = por %p1439_p4, %p1438_p1 }
  0x1a   : > { %p1434_p0 = pneg %p1433_p13 }
  0x1c   : > { %p1441_p2 = pnand %p1440_p3, %p1434_p0 }
  0x1e   : > { %1444 = shalt.err (!%p1441_p2)
}
  0x1f   : > { %s1491_s14 = smov 64   ;;  %s1492_s15 = smov 4  }
  0x20   : > { %1363 = dma.hbm_to_vmem [thread:$0]  (!%p1550_p5), %s1733_s3, 256, %s203_s24, [#allocation4], %s1491_s14, %s1491_s14, %s1492_s15  }
  0x21   : > { %s1445_s20 = scalar_lea.hbm %s1734_s4, 256 }
  0x22   : > { %p1446_p6 = scmp.ne.s32.totalorder %s1734_s4, %s1445_s20  ;;  %p1452_p8 = scmp.lt.u32.totalorder %s1445_s20, %s1734_s4 }
  0x24   : > { %p1448_p2 = pnand %p1446_p6, %p1419_p7 }
  0x26   : > { %p1449_p3 = pneg %p1448_p2 }
  0x28   : > { %p1454_p9 = pnand %p1452_p8, %p1449_p3 }
  0x2a   : > { %1457 = shalt.err (!%p1454_p9)
}
  0x2b   : > { %s1458_s24 = scalar_lea.vmem %s1554_s28, 256  ;;  %p1466_p13 = scmp.lt.s32.totalorder %s1554_s28, %s1554_s28 }
  0x2c   : > { %p1459_p10 = scmp.ne.s32.totalorder %s1554_s28, %s1458_s24  ;;  %p1467_p0 = scmp.lt.s32.totalorder %s1458_s24, %s1458_s24 }
  0x2e   : > { %p1461_p11 = pnand %p1459_p10, %p1419_p7  ;;  %p1468_p1 = por %p1467_p0, %p1466_p13 }
  0x30   : > { %p1462_p12 = pneg %p1461_p11 }
  0x32   : > { %p1469_p4 = pnand %p1468_p1, %p1462_p12 }
  0x34   : > { %1472 = shalt.err (!%p1469_p4)
}
  0x35   : > { %1366 = dma.hbm_to_vmem [thread:$0]  (!%p1550_p5), %s1734_s4, 256, %s1554_s28, [#allocation6], %s1491_s14, %s1491_s14, %s1492_s15  }
  0x36   : > { %p1743_p6 = scmp.ne.s32.totalorder %s1740_s25, 0 }
  0x37   : > { %p1744_p2 = scmp.ne.s32.totalorder (!%p1743_p6), %s1741_s26, 0 }
  0x38   : > { %254 = sbr.rel (%p1743_p6) target bundleno = 1424 (0x590), region = 44 }
  0x3f   : > { %1478 = dma.done.wait (%p1744_p2), [#allocation4], 256  }
  0x40   : > { %1480 = vsyncadd (%p1744_p2), [#allocation4], 4294967040 }
  0x41   : > { %1482 = dma.done.wait (%p1744_p2), [#allocation6], 256  }
  0x42   : > { %1484 = vsyncadd (%p1744_p2), [#allocation6], 4294967040  ;;  %s1615_s29 = sshll.u32 %s1177_s22, 2  ;;  %v1383_v0 = vld [vmem:[%s1732_s2] sm:$0xff]   ;;  %vm331_vm0 = vcmask 261120   ;;  %v1384_v1 = vld [vmem:[%s1732_s2 + $0x8] sm:$0xff]   ;;  %v747_v36 = vlaneseq }
  0x43   : > { %p295_p5 = scmp.lt.s32.totalorder %s1615_s29, 11  ;;  %s1247_s25 = sadd.s32 4, %s1615_s29  ;;  %1288 = vmatprep.subr.bf16.mxu0 %v1383_v0  ;;  %v1386_v3 = vld [vmem:[%s1732_s2 + $0x20] sm:$0xff]   ;;  %v1388_v6 = vld [vmem:[%s1732_s2 + $0x28] sm:$0xff]   ;;  %v1394_v9 = vld [vmem:[%s1732_s2 + $0x10] sm:$0xff]   ;;  %vm369_vm1 = vcmask 1043456  }
  0x44   : > { %p302_p7 = scmp.lt.s32.totalorder %s1247_s25, 11  ;;  %1289 = vmatpush3.bf16.msra.mxu0 %v1383_v0  ;;  %v1395_v11 = vld [vmem:[%s1732_s2 + $0x18] sm:$0xff]   ;;  %1280 = vmatprep.subr.bf16.mxu1 %v1394_v9  ;;  %v1389_v15 = vld [vmem:[%s1732_s2 + $0x30] sm:$0xff]   ;;  %v1392_v26 = vld [vmem:[%s1732_s2 + $0x40] sm:$0xff]   ;;  %v1679_v37 = vshrl.u32 %v747_v36, 7  ;;  %p309_p3 = scmp.lt.s32.totalorder %s1615_s29, 7 }
  0x45   : > { %s296_s28 = scalar_select %p295_p5, %s1615_s29, 11  ;;  %1290 = vmatprep.subr.bf16.mxu0 %v1384_v1  ;;  %1281 = vmatpush3.bf16.msra.mxu1 %v1394_v9  ;;  %v1391_v24 = vld [vmem:[%s1732_s2 + $0x38] sm:$0xff]   ;;  %v1396_v30 = vld [vmem:[%s1732_s2 + $0x48] sm:$0xff]   ;;  %v1685_v39 = vld [vmem:[%s1735_s5] sm:$0xff]  ;;  %vm1082_vm2 = vcmask 257024  }
  0x46   : > { %s1746_s25 = smov (!%p302_p7, %s1247_s25), 11  ;;  %1282 = vmatprep.subr.bf16.mxu1 %v1395_v11  ;;  %v749_v38 = vsub.s32 0, %v1679_v37  ;;  %s1748_s29 = smov (!%p309_p3, %s1615_s29), 7 }
  0x47   : > { %s1187_s10 = sshll.u32 %s296_s28, 2  ;;  %s1189_s16 = sshll.u32 %s1746_s25, 2 }
  0x48   : > { %s298_s13 = scalar_lea.vmem %s1730_s0, %s1187_s10  ;;  %s305_s23 = scalar_lea.vmem %s1731_s1, %s1189_s16  ;;  %1291 = vmatpush3.bf16.msra.mxu0 %v1384_v1  ;;  %v750_v40 = vrot.slane %v1685_v39, %v749_v38 }
  0x49   : > { %v1385_v2 = vld [vmem:[%s298_s13] sm:$0xff]   ;;  %v1387_v4 = vld [vmem:[%s298_s13 + $0x8] sm:$0xff]   ;;  %1296 = vmatprep.subr.bf16.mxu0 %v1386_v3  ;;  %1283 = vmatpush3.bf16.msra.mxu1 %v1395_v11  ;;  %s1191_s16 = sshll.u32 %s1748_s29, 2 }
  0x4a   : > { %332 = vst.msk [vmem:[#allocation2] sm:$0xff] %vm331_vm0, %v1385_v2  ;;  %333 = vst.msk [vmem:[#allocation2 + $0x8] sm:$0xff] %vm331_vm0, %v1387_v4  ;;  %v1390_v5 = vld [vmem:[%s305_s23] sm:$0xff]   ;;  %v1393_v7 = vld [vmem:[%s305_s23 + $0x8] sm:$0xff]   ;;  %s312_s19 = scalar_lea.vmem %s1736_s6, %s1191_s16 }
  0x4b   : > { %350 = vst.msk [vmem:[#allocation2 + $0x10] sm:$0xff] %vm331_vm0, %v1390_v5  ;;  %351 = vst.msk [vmem:[#allocation2 + $0x18] sm:$0xff] %vm331_vm0, %v1393_v7 }
  0x51   : > { %v353_v8 = vld [vmem:[#allocation2] sm:$0xff]  ;;  %v1646_v10 = vld [vmem:[#allocation2 + $0x8] sm:$0xff] }
  0x52   : > { %1292 = vmatprep.mubr.msk.bf16.mxu0 %vm331_vm0, %v353_v8  ;;  %v583_v12 = vld [vmem:[#allocation2 + $0x8] sm:$0xf0]  ;;  %v359_v13 = vld [vmem:[#allocation2] sm:$0xf0]  ;;  %v371_v14 = vrot.slane %v1646_v10, 4  ;;  %v509_v20 = vld [vmem:[#allocation2 + $0x10] sm:$0xff]  ;;  %v759_v52 = vunpack.c.l.bf16 %v1646_v10  ;;  %v760_v58 = vunpack.c.h.bf16 %v1646_v10 }
  0x53   : > { %1293 = vmatmul.mubr.msk.bf16.vlgmr.msra.gmra.mrb[0].mxu0 %vm331_vm0, %v1646_v10  ;;  %v370_v16 = vrot.slane %v359_v13, 4  ;;  %v360_v17 = vld [vmem:[#allocation2 + $0x10] sm:$0xf]  ;;  %v594_v21 = vrot.slane %v583_v12, 4  ;;  %v595_v22 = vrot.slane %v509_v20, 4  ;;  %v670_v31 = vld [vmem:[#allocation2 + $0x18] sm:$0xff]  ;;  %v761_v49 = vunpack.c.l.bf16 %v509_v20 }
  0x54   : > { %1297 = vmatpush3.bf16.msra.mxu0 %v1386_v3  ;;  %1300 = vmatprep.mubr.msk.bf16.mxu0 %vm331_vm0, %v1646_v10  ;;  %v373_v18 = vrot.slane %v360_v17, 4  ;;  %v585_v27 = vld [vmem:[#allocation2 + $0x18] sm:$0xf]  ;;  %v762_v55 = vunpack.c.h.bf16 %v509_v20 }
  0x55   : > { %1298 = vmatprep.subr.bf16.mxu0 %v1388_v6  ;;  %v372_v19 = vsel %vm369_vm1, %v370_v16, %v371_v14  ;;  %v596_v25 = vsel %vm369_vm1, %v594_v21, %v595_v22  ;;  %v597_v28 = vrot.slane %v585_v27, 4 }
  0x56   : > { %1284 = vmatprep.mubr.msk.bf16.mxu1 %vm331_vm0, %v372_v19  ;;  %v374_v23 = vsel %vm369_vm1, %v371_v14, %v373_v18 }
  0x57   : > { %1285 = vmatmul.mubr.msk.bf16.vlgmr.msra.gmra.mrb[0].mxu1 %vm331_vm0, %v374_v23  ;;  %v598_v29 = vsel %vm369_vm1, %v595_v22, %v597_v28 }
  0x58   : > { %1299 = vmatpush3.bf16.msra.mxu0 %v1388_v6 }
  0x59   : > { %1304 = vmatprep.subr.bf16.mxu0 %v1389_v15 }
  0x5f   : > { %1301 = vmatmul.mubr.msk.bf16.vlgmr.msra.gmra.mrb[0].mxu0 %vm331_vm0, %v509_v20 }
  0x60   : > { %1305 = vmatpush3.bf16.msra.mxu0 %v1389_v15  ;;  %1308 = vmatprep.mubr.msk.bf16.mxu0 %vm331_vm0, %v596_v25  ;;  %v1397_v25 = vld [vmem:[#allocation3] sm:$0xff]  }
  0x61   : > { %1306 = vmatprep.subr.bf16.mxu0 %v1391_v24  ;;  %1320 = vmatprep.subr.bf16.mxu1 %v1397_v25 }
  0x62   : > { %1321 = vmatpush3.bf16.msra.mxu1 %v1397_v25 }
  0x64   : > { %1307 = vmatpush3.bf16.msra.mxu0 %v1391_v24 }
  0x65   : > { %1312 = vmatprep.subr.bf16.mxu0 %v1392_v26 }
  0x6b   : > { %1309 = vmatmul.mubr.msk.bf16.vlgmr.msra.gmra.mrb[0].mxu0 %vm331_vm0, %v598_v29 }
  0x6c   : > { %1313 = vmatpush3.bf16.msra.mxu0 %v1392_v26  ;;  %1316 = vmatprep.mubr.msk.bf16.mxu0 %vm331_vm0, %v509_v20  ;;  %v1398_v26 = vld [vmem:[#allocation3 + $0x8] sm:$0xff]  }
  0x6d   : > { %1314 = vmatprep.subr.bf16.mxu0 %v1396_v30  ;;  %1322 = vmatprep.subr.bf16.mxu1 %v1398_v26 }
  0x6e   : > { %1323 = vmatpush3.bf16.msra.mxu1 %v1398_v26 }
  0x70   : > { %1315 = vmatpush3.bf16.msra.mxu0 %v1396_v30 }
  0x77   : > { %1317 = vmatmul.mubr.msk.bf16.vlgmr.msra.gmra.mrb[0].mxu0 %vm331_vm0, %v670_v31 }
 0x12a   : > { %v1286_v32 = vpop.f32.mrb[0].mxu1 }
 0x12b   : > { %v427_v33 = vpop.f32.mrb[1].mxu1 }
 0x12c   : > { %v1287_v34 = vpop.f32.mrb[2].mxu1 }
 0x12d   : > { %v430_v35 = vpop.f32.mrb[3].mxu1 }
 0x14a   : > { %v1318_v41 = vpop.f32.mrb[0].mxu0 }
 0x14b   : > { %v1336_v42 = vadd.f32 %v1318_v41, %v1286_v32  ;;  %v728_v43 = vpop.f32.mrb[1].mxu0  ;;  %v822_v41 = vsub.s32 1, %v1679_v37 }
 0x14c   : > { %v1337_v44 = vadd.f32 %v728_v43, %v427_v33  ;;  %v1319_v45 = vpop.f32.mrb[2].mxu0 }
 0x14d   : > { %v753_v46 = vadd.f32 %v1336_v42, %v750_v40  ;;  %v1338_v47 = vadd.f32 %v1319_v45, %v1287_v34  ;;  %v731_v48 = vpop.f32.mrb[3].mxu0  ;;  %v830_v45 = vsub.s32 2, %v1679_v37 }
 0x14e   : > { %v751_v50 = vadd.f32 %v1337_v44, %v750_v40  ;;  %v1339_v51 = vadd.f32 %v731_v48, %v430_v35  ;;  %v823_v44 = vrot.slane %v1685_v39, %v822_v41 }
 0x14f   : > { %v757_v53 = vmax.f32 %v753_v46, 0.0  ;;  %v754_v54 = vadd.f32 %v1338_v47, %v750_v40 }
 0x150   : > { %v755_v56 = vmax.f32 %v751_v50, 0.0  ;;  %v752_v57 = vadd.f32 %v1339_v51, %v750_v40  ;;  %v831_v50 = vrot.slane %v1685_v39, %v830_v45 }
 0x151   : > { %v758_v59 = vmax.f32 %v754_v54, 0.0  ;;  %v765_v60 = vadd.f32 %v761_v49, %v757_v53 }
 0x152   : > { %v756_v61 = vmax.f32 %v752_v57, 0.0  ;;  %v763_v62 = vadd.f32 %v759_v52, %v755_v56 }
 0x153   : > { %v773_v63 = vsel %vm331_vm0, %v765_v60, 0.0  ;;  %v766_v0 = vadd.f32 %v762_v55, %v758_v59 }
 0x154   : > { %774 = vadd.xlane.f32.xlu1 %v773_v63  ;;  %v767_v1 = vsel %vm331_vm0, %v763_v62, 0.0  ;;  %v764_v2 = vadd.f32 %v760_v58, %v756_v61  ;;  %v1399_v63 = vld [vmem:[#allocation5] sm:$0xff]  }
 0x155   : > { %768 = vadd.xlane.f32.xlu0 %v767_v1  ;;  %v776_v3 = vsel %vm331_vm0, %v766_v0, 0.0  ;;  %1328 = vmatprep.subr.bf16.mxu1 %v1399_v63  ;;  %v844_v1 = vsub.s32 3, %v1679_v37 }
 0x156   : > { %v770_v4 = vsel %vm331_vm0, %v764_v2, 0.0 }
 0x158   : > { %777 = vadd.xlane.f32.xlu1 %v776_v3 }
 0x159   : > { %771 = vadd.xlane.f32.xlu0 %v770_v4 }
 0x1e1   : > { %v775_v5 = vpop.xlane.xlu1 %774 }
 0x1e2   : > { %v782_v6 = vmul.f32 0.03125, %v775_v5  ;;  %v769_v7 = vpop.xlane.xlu0 %768 }
 0x1e3   : > { %v780_v8 = vmul.f32 0.03125, %v769_v7 }
 0x1e4   : > { %v786_v9 = vsub.f32 %v765_v60, %v782_v6 }
 0x1e5   : > { %v784_v10 = vsub.f32 %v763_v62, %v780_v8  ;;  %v778_v11 = vpop.xlane.xlu1 %777 }
 0x1e6   : > { %v783_v12 = vmul.f32 0.03125, %v778_v11  ;;  %v772_v13 = vpop.xlane.xlu0 %771  ;;  %v790_v19 = vmul.f32 %v786_v9, %v786_v9 }
 0x1e7   : > { %v781_v14 = vmul.f32 0.03125, %v772_v13  ;;  %v788_v15 = vmul.f32 %v784_v10, %v784_v10 }
 0x1e8   : > { %v787_v16 = vsub.f32 %v766_v0, %v783_v12  ;;  %v798_v21 = vsel %vm331_vm0, %v790_v19, 0.0  ;;  %v1400_v0 = vld [vmem:[#allocation5 + $0x8] sm:$0xff]  }
 0x1e9   : > { %v785_v17 = vsub.f32 %v764_v2, %v781_v14  ;;  %v792_v18 = vsel %vm331_vm0, %v788_v15, 0.0  ;;  %v845_v2 = vrot.slane %v1685_v39, %v844_v1 }
 0x1ea   : > { %793 = vadd.xlane.f32.xlu0 %v792_v18  ;;  %v791_v23 = vmul.f32 %v787_v16, %v787_v16 }
 0x1eb   : > { %v789_v20 = vmul.f32 %v785_v17, %v785_v17 }
 0x1ec   : > { %v801_v24 = vsel %vm331_vm0, %v791_v23, 0.0 }
 0x1ed   : > { %v795_v22 = vsel %vm331_vm0, %v789_v20, 0.0 }
 0x1ee   : > { %799 = vadd.xlane.f32.xlu0 %v798_v21  ;;  %796 = vadd.xlane.f32.xlu1 %v795_v22 }
 0x1f2   : > { %802 = vadd.xlane.f32.xlu1 %v801_v24 }
 0x277   : > { %v794_v27 = vpop.xlane.xlu0 %793 }
 0x278   : > { %v804_v28 = vmul.f32 0.03125, %v794_v27 }
 0x27a   : > { %v808_v29 = vadd.f32 1e-05, %v804_v28 }
 0x27b   : > { %v797_v30 = vpop.xlane.xlu1 %796  ;;  %v800_v31 = vpop.xlane.xlu0 %799 }
 0x27c   : > { %1401 = vrsqrt.f32 %v808_v29  ;;  %v805_v32 = vmul.f32 0.03125, %v797_v30  ;;  %v806_v33 = vmul.f32 0.03125, %v800_v31 }
 0x27e   : > { %v809_v34 = vadd.f32 1e-05, %v805_v32  ;;  %v810_v35 = vadd.f32 1e-05, %v806_v33 }
 0x27f   : > { %v803_v36 = vpop.xlane.xlu1 %802 }
 0x280   : > { %1403 = vrsqrt.f32 %v809_v34  ;;  %v807_v38 = vmul.f32 0.03125, %v803_v36 }
 0x281   : > { %1405 = vrsqrt.f32 %v810_v35 }
 0x282   : > { %v811_v40 = vadd.f32 1e-05, %v807_v38 }
 0x284   : > { %1407 = vrsqrt.f32 %v811_v40 }
 0x286   : > { %v1402_v42 = vpop.eup %1401 }
 0x287   : > { %v816_v43 = vmul.f32 %v1402_v42, %v784_v10 }
 0x289   : > { %v824_v49 = vmul.f32 %v823_v44, %v816_v43 }
 0x28a   : > { %v1404_v46 = vpop.eup %1403 }
 0x28b   : > { %v1406_v47 = vpop.eup %1405  ;;  %v817_v48 = vmul.f32 %v1404_v46, %v785_v17  ;;  %v832_v56 = vadd.f32 %v831_v50, %v824_v49  ;;  %v925_v17 = vsub.s32 4, %v1679_v37 }
 0x28c   : > { %v818_v51 = vmul.f32 %v1406_v47, %v786_v9 }
 0x28d   : > { %v825_v52 = vmul.f32 %v823_v44, %v817_v48  ;;  %v926_v18 = vrot.slane %v1685_v39, %v925_v17 }
 0x28e   : > { %v1408_v53 = vpop.eup %1407  ;;  %v826_v54 = vmul.f32 %v823_v44, %v818_v51 }
 0x28f   : > { %v819_v55 = vmul.f32 %v1408_v53, %v787_v16  ;;  %v833_v57 = vadd.f32 %v831_v50, %v825_v52 }
 0x290   : > { %v834_v60 = vadd.f32 %v831_v50, %v826_v54 }
 0x291   : > { %v827_v58 = vmul.f32 %v823_v44, %v819_v55  ;;  %v836_v59 = vpack.c.bf16 %v833_v57, %v832_v56 }
 0x293   : > { %1324 = vmatprep.mubr.msk.bf16.mxu1 %vm331_vm0, %v836_v59  ;;  %v835_v61 = vadd.f32 %v831_v50, %v827_v58 }
 0x295   : > { %v837_v62 = vpack.c.bf16 %v835_v61, %v834_v60 }
 0x297   : > { %1325 = vmatmul.mubr.msk.bf16.vlgmr.msra.gmra.mrb[4].mxu1 %vm331_vm0, %v837_v62 }
 0x298   : > { %1329 = vmatpush3.bf16.msra.mxu1 %v1399_v63 }
 0x299   : > { %1330 = vmatprep.subr.bf16.mxu1 %v1400_v0 }
 0x29c   : > { %1331 = vmatpush3.bf16.msra.mxu1 %v1400_v0 }
 0x36a   : > { %v1326_v3 = vpop.f32.mrb[4].mxu1 }
 0x36b   : > { %v907_v4 = vadd.f32 %v1326_v3, %v845_v2  ;;  %v898_v5 = vpop.f32.mrb[5].mxu1 }
 0x36c   : > { %v899_v6 = vadd.f32 %v898_v5, %v845_v2  ;;  %v1327_v7 = vpop.f32.mrb[6].mxu1  ;;  %v1052_v5 = vsub.s32 5, %v1679_v37 }
 0x36d   : > { %v910_v8 = vadd.f32 %v1327_v7, %v845_v2  ;;  %v901_v9 = vpop.f32.mrb[7].mxu1  ;;  %v915_v11 = vmax.f32 %v907_v4, 0.0 }
 0x36e   : > { %v902_v10 = vadd.f32 %v901_v9, %v845_v2  ;;  %v913_v13 = vmax.f32 %v899_v6, 0.0  ;;  %v1060_v6 = vsub.s32 6, %v1679_v37  ;;  %v1053_v7 = vrot.slane %v1685_v39, %v1052_v5 }
 0x36f   : > { %v916_v12 = vmax.f32 %v910_v8, 0.0 }
 0x370   : > { %v914_v14 = vmax.f32 %v902_v10, 0.0  ;;  %v1061_v9 = vrot.slane %v1685_v39, %v1060_v6 }
 0x371   : > { %v918_v15 = vpack.c.bf16 %v916_v12, %v915_v11 }
 0x372   : > { %v917_v16 = vpack.c.bf16 %v914_v14, %v913_v13 }
 0x374   : > { %1332 = vmatprep.mubr.msk.bf16.mxu1 %vm331_vm0, %v917_v16 }
 0x375   : > { %1333 = vmatmul.mubr.msk.bf16.vlgmr.msra.gmra.mrb[8].mxu1 %vm331_vm0, %v918_v15 }
 0x448   : > { %v1334_v19 = vpop.f32.mrb[8].mxu1 }
 0x449   : > { %v979_v20 = vpop.f32.mrb[9].mxu1  ;;  %v988_v21 = vadd.f32 %v1334_v19, %v926_v18 }
 0x44a   : > { %v980_v22 = vadd.f32 %v979_v20, %v926_v18  ;;  %v1335_v23 = vpop.f32.mrb[10].mxu1 }
 0x44b   : > { %v982_v24 = vpop.f32.mrb[11].mxu1  ;;  %v991_v25 = vadd.f32 %v1335_v23, %v926_v18  ;;  %v996_v30 = vadd.f32 %v988_v21, %v834_v60 }
 0x44c   : > { %v983_v26 = vadd.f32 %v982_v24, %v926_v18  ;;  %v994_v27 = vadd.f32 %v980_v22, %v832_v56 }
 0x44d   : > { %v997_v32 = vadd.f32 %v991_v25, %v835_v61  ;;  %v1004_v33 = vsel %vm331_vm0, %v996_v30, 0.0 }
 0x44e   : > { %v998_v28 = vsel %vm331_vm0, %v994_v27, 0.0  ;;  %v995_v29 = vadd.f32 %v983_v26, %v833_v57 }
 0x44f   : > { %999 = vadd.xlane.f32.xlu0 %v998_v28  ;;  %v1007_v34 = vsel %vm331_vm0, %v997_v32, 0.0 }
 0x450   : > { %v1001_v31 = vsel %vm331_vm0, %v995_v29, 0.0 }
 0x451   : > { %1002 = vadd.xlane.f32.xlu1 %v1001_v31 }
 0x453   : > { %1005 = vadd.xlane.f32.xlu0 %v1004_v33 }
 0x455   : > { %1008 = vadd.xlane.f32.xlu1 %v1007_v34 }
 0x4dc   : > { %v1000_v35 = vpop.xlane.xlu0 %999 }
 0x4dd   : > { %v1010_v36 = vmul.f32 0.03125, %v1000_v35 }
 0x4de   : > { %v1003_v38 = vpop.xlane.xlu1 %1002 }
 0x4df   : > { %v1014_v40 = vsub.f32 %v994_v27, %v1010_v36  ;;  %v1011_v41 = vmul.f32 0.03125, %v1003_v38 }
 0x4e0   : > { %v1006_v42 = vpop.xlane.xlu0 %1005 }
 0x4e1   : > { %v1015_v43 = vsub.f32 %v995_v29, %v1011_v41  ;;  %v1012_v44 = vmul.f32 0.03125, %v1006_v42  ;;  %v1018_v45 = vmul.f32 %v1014_v40, %v1014_v40 }
 0x4e2   : > { %v1009_v46 = vpop.xlane.xlu1 %1008 }
 0x4e3   : > { %v1016_v47 = vsub.f32 %v996_v30, %v1012_v44  ;;  %v1013_v48 = vmul.f32 0.03125, %v1009_v46  ;;  %v1022_v49 = vsel %vm331_vm0, %v1018_v45, 0.0  ;;  %v1019_v50 = vmul.f32 %v1015_v43, %v1015_v43 }
 0x4e4   : > { %1023 = vadd.xlane.f32.xlu0 %v1022_v49 }
 0x4e5   : > { %v1017_v51 = vsub.f32 %v997_v32, %v1013_v48  ;;  %v1025_v52 = vsel %vm331_vm0, %v1019_v50, 0.0  ;;  %v1020_v53 = vmul.f32 %v1016_v47, %v1016_v47 }
 0x4e6   : > { %1026 = vadd.xlane.f32.xlu1 %v1025_v52 }
 0x4e7   : > { %v1028_v54 = vsel %vm331_vm0, %v1020_v53, 0.0  ;;  %v1021_v55 = vmul.f32 %v1017_v51, %v1017_v51 }
 0x4e8   : > { %1029 = vadd.xlane.f32.xlu0 %v1028_v54 }
 0x4e9   : > { %v1031_v56 = vsel %vm331_vm0, %v1021_v55, 0.0 }
 0x4ea   : > { %1032 = vadd.xlane.f32.xlu1 %v1031_v56 }
 0x571   : > { %v1024_v57 = vpop.xlane.xlu0 %1023 }
 0x572   : > { %v1034_v58 = vmul.f32 0.03125, %v1024_v57 }
 0x573   : > { %v1027_v59 = vpop.xlane.xlu1 %1026 }
 0x574   : > { %v1038_v60 = vadd.f32 1e-05, %v1034_v58  ;;  %v1035_v61 = vmul.f32 0.03125, %v1027_v59 }
 0x575   : > { %v1030_v62 = vpop.xlane.xlu0 %1029 }
 0x576   : > { %1409 = vrsqrt.f32 %v1038_v60  ;;  %v1039_v63 = vadd.f32 1e-05, %v1035_v61  ;;  %v1036_v0 = vmul.f32 0.03125, %v1030_v62 }
 0x577   : > { %v1033_v1 = vpop.xlane.xlu1 %1032 }
 0x578   : > { %1411 = vrsqrt.f32 %v1039_v63  ;;  %v1040_v2 = vadd.f32 1e-05, %v1036_v0  ;;  %v1037_v3 = vmul.f32 0.03125, %v1033_v1 }
 0x57a   : > { %1413 = vrsqrt.f32 %v1040_v2  ;;  %v1041_v4 = vadd.f32 1e-05, %v1037_v3 }
 0x57c   : > { %1415 = vrsqrt.f32 %v1041_v4 }
 0x580   : > { %v1410_v8 = vpop.eup %1409 }
 0x581   : > { %v1046_v10 = vmul.f32 %v1410_v8, %v1014_v40 }
 0x582   : > { %v1412_v11 = vpop.eup %1411 }
 0x583   : > { %v1054_v12 = vmul.f32 %v1053_v7, %v1046_v10  ;;  %v1047_v13 = vmul.f32 %v1412_v11, %v1015_v43 }
 0x584   : > { %v1414_v14 = vpop.eup %1413 }
 0x585   : > { %v1062_v15 = vadd.f32 %v1061_v9, %v1054_v12  ;;  %v1055_v16 = vmul.f32 %v1053_v7, %v1047_v13  ;;  %v1048_v17 = vmul.f32 %v1414_v14, %v1016_v47 }
 0x586   : > { %v1416_v18 = vpop.eup %1415 }
 0x587   : > { %v1248_v37 = vpack.c.bf16 %v1062_v15, %v1062_v15  ;;  %v1063_v19 = vadd.f32 %v1061_v9, %v1055_v16  ;;  %v1056_v20 = vmul.f32 %v1053_v7, %v1048_v17  ;;  %v1049_v21 = vmul.f32 %v1416_v18, %v1017_v51 }
 0x589   : > { %1083 = vst.msk [vmem:[%s312_s19] sm:$0xf] %vm1082_vm2, %v1248_v37  ;;  %v1249_v39 = vpack.c.bf16 %v1063_v19, %v1063_v19  ;;  %v1064_v22 = vadd.f32 %v1061_v9, %v1056_v20  ;;  %v1057_v23 = vmul.f32 %v1053_v7, %v1049_v21 }
 0x58b   : > { %1084 = vst.msk [vmem:[%s312_s19 + $0x4] sm:$0xf] %vm1082_vm2, %v1249_v39  ;;  %v1250_v24 = vpack.c.bf16 %v1064_v22, %v1064_v22  ;;  %v1065_v25 = vadd.f32 %v1061_v9, %v1057_v23 }
 0x58d   : > { %1085 = vst.msk [vmem:[%s312_s19 + $0x8] sm:$0xf] %vm1082_vm2, %v1250_v24  ;;  %v1251_v26 = vpack.c.bf16 %v1065_v25, %v1065_v25 }
 0x58f   : > { %1086 = vst.msk [vmem:[%s312_s19 + $0xc] sm:$0xf] %vm1082_vm2, %v1251_v26 }
 0x590 PF: > { %s18_s21 = sadd.s32 1, %s1487_s21  }
 0x591   : > { %p15_p8 = scmp.ge.s32.totalorder %s18_s21, 4  }
 0x593   :  { %17 = sbr.rel (!%p15_p8) target bundleno = 2 (0x2), region = 90 }
 0x59a   :  { %1109 = vsyncpa [#allocation4], 1 }
 0x59b   :  { %1111 = vsyncpa [#allocation4 + $0x1], 1 }
 0x59c   :  { %1112 = vsyncpa [#allocation6], 1 }

// kernel: tds_conv_encoder_pallas.3
= control target key start
LH: loop header
LB: loop body
LE: loop exit
PB: predicated region body
PF: predicated region fallthrough
CT: control target
= control target key end

     0   :  { %s1381_s21 = smov 0   ;;  %s1516_s0 = inlined_call_operand.vmem [shape: bf16[96,32], index: 0, kind: input, shape index: {}, may-alias: {0,1}]   ;;  %s1517_s1 = inlined_call_operand.vmem [shape: bf16[96,32], index: 1, kind: input, shape index: {}, may-alias: {0,1}]   ;;  %s1518_s2 = inlined_call_operand.vmem [shape: bf16[5,32,32], index: 2, kind: input, shape index: {}]   ;;  %s1519_s3 = inlined_call_operand.vmem [shape: bf16[32,32], index: 3, kind: input, shape index: {}]   ;;  %s1520_s4 = inlined_call_operand.vmem [shape: bf16[32,32], index: 4, kind: input, shape index: {}]   ;;  %s1521_s5 = inlined_call_operand.vmem [shape: f32[8,32], index: 5, kind: input, shape index: {}]   ;;  %s1522_s6 = inlined_call_operand.vmem [shape: bf16[64,32], index: 6, kind: output, shape index: {}]  }
   0x1 LB: > { %s1125_s22 = sadd.s32 4294967295, %s1344_s21   ;;  %p1129_p0 = scmp.ge.s32.totalorder %s1344_s21, 1  ;;  %s1344_s21 = sphi %s1381_s21, %s16_s21  }
   0x2   : > { %p228_p1 = scmp.lt.s32.totalorder %s1344_s21, 3 }
   0x4   : > { %p229_p2 = pnand %p1129_p0, %p228_p1 }
   0x5   : > { %v1304_v0 = vld [vmem:[%s1518_s2] sm:$0xff] (!%p229_p2)   ;;  %s1392_s25 = sshll.u32 (!%p229_p2), %s1125_s22, 2  ;;  %v1305_v1 = vld [vmem:[%s1518_s2 + $0x8] sm:$0xff] (!%p229_p2)   ;;  %vm301_vm0 = vcmask (!%p229_p2), 261120   ;;  %v1315_v5 = vld [vmem:[%s1518_s2 + $0x10] sm:$0xff] (!%p229_p2)   ;;  %vm339_vm1 = vcmask (!%p229_p2), 1043456   ;;  %v717_v36 = vlaneseq (!%p229_p2) }
   0x6   : > { %232 = sbr.rel (%p229_p2) target bundleno = 1368 (0x558), region = 44  ;;  %p265_p3 = scmp.lt.s32.totalorder (!%p229_p2), %s1392_s25, 11  ;;  %1232 = vmatprep.subr.bf16.mxu0 (!%p229_p2), %v1304_v0  ;;  %v1307_v2 = vld [vmem:[%s1518_s2 + $0x20] sm:$0xff] (!%p229_p2)   ;;  %1224 = vmatprep.subr.bf16.mxu1 (!%p229_p2), %v1315_v5  ;;  %v1316_v8 = vld [vmem:[%s1518_s2 + $0x18] sm:$0xff] (!%p229_p2)   ;;  %v1309_v9 = vld [vmem:[%s1518_s2 + $0x28] sm:$0xff] (!%p229_p2)   ;;  %vm1052_vm2 = vcmask (!%p229_p2), 257024  }
   0x7   : > { %1233 = vmatpush3.bf16.msra.mxu0 (!%p229_p2), %v1304_v0  ;;  %s1191_s7 = sadd.s32 (!%p229_p2), 4, %s1392_s25  ;;  %1225 = vmatpush3.bf16.msra.mxu1 (!%p229_p2), %v1315_v5  ;;  %v1310_v15 = vld [vmem:[%s1518_s2 + $0x30] sm:$0xff] (!%p229_p2)   ;;  %v1312_v24 = vld [vmem:[%s1518_s2 + $0x38] sm:$0xff] (!%p229_p2)   ;;  %v1313_v26 = vld [vmem:[%s1518_s2 + $0x40] sm:$0xff] (!%p229_p2)   ;;  %v1453_v37 = vshrl.u32 (!%p229_p2), %v717_v36, 7  ;;  %p279_p5 = scmp.lt.s32.totalorder (!%p229_p2), %s1392_s25, 7 }
   0x8   : > { %1234 = vmatprep.subr.bf16.mxu0 (!%p229_p2), %v1305_v1  ;;  %p272_p4 = scmp.lt.s32.totalorder (!%p229_p2), %s1191_s7, 11  ;;  %1226 = vmatprep.subr.bf16.mxu1 (!%p229_p2), %v1316_v8  ;;  %v1317_v30 = vld [vmem:[%s1518_s2 + $0x48] sm:$0xff] (!%p229_p2)   ;;  %v1459_v39 = vld [vmem:[%s1521_s5] sm:$0xff] (!%p229_p2) }
   0x9   : > { %v719_v38 = vsub.s32 (!%p229_p2), 0, %v1453_v37 }
   0xb   : > { %1235 = vmatpush3.bf16.msra.mxu0 (!%p229_p2), %v1305_v1  ;;  %1227 = vmatpush3.bf16.msra.mxu1 (!%p229_p2), %v1316_v8  ;;  %v720_v40 = vrot.slane (!%p229_p2), %v1459_v39, %v719_v38 }
   0xc   : > { %1240 = vmatprep.subr.bf16.mxu0 (!%p229_p2), %v1307_v2 }
   0xd   : > { %s266_s28 = scalar_select %p265_p3, %s1392_s25, 11 }
   0xe   : > { %s1524_s7 = smov (!%p272_p4, %s1191_s7), 11  ;;  %s1526_s25 = smov (!%p279_p5, %s1392_s25), 7 }
   0xf   : > { %s1131_s8 = sshll.u32 %s266_s28, 2  ;;  %s1133_s12 = sshll.u32 %s1524_s7, 2 }
  0x10   : > { %s268_s11 = scalar_lea.vmem %s1516_s0, %s1131_s8  ;;  %s275_s15 = scalar_lea.vmem %s1517_s1, %s1133_s12 }
  0x11   : > { %v1306_v3 = vld [vmem:[%s268_s11] sm:$0xff]   ;;  %v1308_v4 = vld [vmem:[%s268_s11 + $0x8] sm:$0xff]   ;;  %s1135_s18 = sshll.u32 %s1526_s25, 2 }
  0x12   : > { %302 = vst.msk [vmem:[#allocation2] sm:$0xff] %vm301_vm0, %v1306_v3  ;;  %303 = vst.msk [vmem:[#allocation2 + $0x8] sm:$0xff] %vm301_vm0, %v1308_v4  ;;  %v1311_v6 = vld [vmem:[%s275_s15] sm:$0xff]   ;;  %v1314_v7 = vld [vmem:[%s275_s15 + $0x8] sm:$0xff]   ;;  %s282_s22 = scalar_lea.vmem %s1522_s6, %s1135_s18 }
  0x13   : > { %320 = vst.msk [vmem:[#allocation2 + $0x10] sm:$0xff] %vm301_vm0, %v1311_v6  ;;  %321 = vst.msk [vmem:[#allocation2 + $0x18] sm:$0xff] %vm301_vm0, %v1314_v7 }
  0x19   : > { %v323_v10 = vld [vmem:[#allocation2] sm:$0xff]  ;;  %v1423_v12 = vld [vmem:[#allocation2 + $0x8] sm:$0xff] }
  0x1a   : > { %v329_v11 = vld [vmem:[#allocation2] sm:$0xf0]  ;;  %1236 = vmatprep.mubr.msk.bf16.mxu0 %vm301_vm0, %v323_v10  ;;  %v341_v14 = vrot.slane %v1423_v12, 4  ;;  %v330_v17 = vld [vmem:[#allocation2 + $0x10] sm:$0xf]  ;;  %v640_v31 = vld [vmem:[#allocation2 + $0x18] sm:$0xff]  ;;  %v729_v52 = vunpack.c.l.bf16 %v1423_v12  ;;  %v730_v58 = vunpack.c.h.bf16 %v1423_v12 }
  0x1b   : > { %v340_v13 = vrot.slane %v329_v11, 4  ;;  %1237 = vmatmul.mubr.msk.bf16.vlgmr.msra.gmra.mrb[0].mxu0 %vm301_vm0, %v1423_v12  ;;  %v553_v18 = vld [vmem:[#allocation2 + $0x8] sm:$0xf0]  ;;  %v343_v19 = vrot.slane %v330_v17, 4  ;;  %v479_v20 = vld [vmem:[#allocation2 + $0x10] sm:$0xff] }
  0x1c   : > { %1241 = vmatpush3.bf16.msra.mxu0 %v1307_v2  ;;  %1244 = vmatprep.mubr.msk.bf16.mxu0 %vm301_vm0, %v1423_v12  ;;  %v564_v22 = vrot.slane %v553_v18, 4  ;;  %v565_v23 = vrot.slane %v479_v20, 4  ;;  %v555_v27 = vld [vmem:[#allocation2 + $0x18] sm:$0xf]  ;;  %v731_v49 = vunpack.c.l.bf16 %v479_v20  ;;  %v732_v55 = vunpack.c.h.bf16 %v479_v20 }
  0x1d   : > { %1242 = vmatprep.subr.bf16.mxu0 %v1309_v9  ;;  %v342_v16 = vsel %vm339_vm1, %v340_v13, %v341_v14  ;;  %v344_v21 = vsel %vm339_vm1, %v341_v14, %v343_v19  ;;  %v567_v28 = vrot.slane %v555_v27, 4 }
  0x1e   : > { %1228 = vmatprep.mubr.msk.bf16.mxu1 %vm301_vm0, %v342_v16  ;;  %v566_v25 = vsel %vm339_vm1, %v564_v22, %v565_v23 }
  0x1f   : > { %1229 = vmatmul.mubr.msk.bf16.vlgmr.msra.gmra.mrb[0].mxu1 %vm301_vm0, %v344_v21  ;;  %v568_v29 = vsel %vm339_vm1, %v565_v23, %v567_v28 }
  0x20   : > { %1243 = vmatpush3.bf16.msra.mxu0 %v1309_v9 }
  0x21   : > { %1248 = vmatprep.subr.bf16.mxu0 %v1310_v15 }
  0x27   : > { %1245 = vmatmul.mubr.msk.bf16.vlgmr.msra.gmra.mrb[0].mxu0 %vm301_vm0, %v479_v20 }
  0x28   : > { %1249 = vmatpush3.bf16.msra.mxu0 %v1310_v15  ;;  %1252 = vmatprep.mubr.msk.bf16.mxu0 %vm301_vm0, %v566_v25  ;;  %v1318_v25 = vld [vmem:[%s1519_s3] sm:$0xff]  }
  0x29   : > { %1250 = vmatprep.subr.bf16.mxu0 %v1312_v24  ;;  %1264 = vmatprep.subr.bf16.mxu1 %v1318_v25 }
  0x2a   : > { %1265 = vmatpush3.bf16.msra.mxu1 %v1318_v25 }
  0x2c   : > { %1251 = vmatpush3.bf16.msra.mxu0 %v1312_v24 }
  0x2d   : > { %1256 = vmatprep.subr.bf16.mxu0 %v1313_v26 }
  0x33   : > { %1253 = vmatmul.mubr.msk.bf16.vlgmr.msra.gmra.mrb[0].mxu0 %vm301_vm0, %v568_v29 }
  0x34   : > { %1257 = vmatpush3.bf16.msra.mxu0 %v1313_v26  ;;  %1260 = vmatprep.mubr.msk.bf16.mxu0 %vm301_vm0, %v479_v20  ;;  %v1319_v26 = vld [vmem:[%s1519_s3 + $0x8] sm:$0xff]  }
  0x35   : > { %1258 = vmatprep.subr.bf16.mxu0 %v1317_v30  ;;  %1266 = vmatprep.subr.bf16.mxu1 %v1319_v26 }
  0x36   : > { %1267 = vmatpush3.bf16.msra.mxu1 %v1319_v26 }
  0x38   : > { %1259 = vmatpush3.bf16.msra.mxu0 %v1317_v30 }
  0x3f   : > { %1261 = vmatmul.mubr.msk.bf16.vlgmr.msra.gmra.mrb[0].mxu0 %vm301_vm0, %v640_v31 }
  0xf2   : > { %v1230_v32 = vpop.f32.mrb[0].mxu1 }
  0xf3   : > { %v397_v33 = vpop.f32.mrb[1].mxu1 }
  0xf4   : > { %v1231_v34 = vpop.f32.mrb[2].mxu1 }
  0xf5   : > { %v400_v35 = vpop.f32.mrb[3].mxu1 }
 0x112   : > { %v1262_v41 = vpop.f32.mrb[0].mxu0 }
 0x113   : > { %v1280_v42 = vadd.f32 %v1262_v41, %v1230_v32  ;;  %v698_v43 = vpop.f32.mrb[1].mxu0  ;;  %v792_v41 = vsub.s32 1, %v1453_v37 }
 0x114   : > { %v1281_v44 = vadd.f32 %v698_v43, %v397_v33  ;;  %v1263_v45 = vpop.f32.mrb[2].mxu0 }
 0x115   : > { %v723_v46 = vadd.f32 %v1280_v42, %v720_v40  ;;  %v1282_v47 = vadd.f32 %v1263_v45, %v1231_v34  ;;  %v701_v48 = vpop.f32.mrb[3].mxu0  ;;  %v800_v45 = vsub.s32 2, %v1453_v37 }
 0x116   : > { %v721_v50 = vadd.f32 %v1281_v44, %v720_v40  ;;  %v1283_v51 = vadd.f32 %v701_v48, %v400_v35  ;;  %v793_v44 = vrot.slane %v1459_v39, %v792_v41 }
 0x117   : > { %v727_v53 = vmax.f32 %v723_v46, 0.0  ;;  %v724_v54 = vadd.f32 %v1282_v47, %v720_v40 }
 0x118   : > { %v725_v56 = vmax.f32 %v721_v50, 0.0  ;;  %v722_v57 = vadd.f32 %v1283_v51, %v720_v40  ;;  %v801_v50 = vrot.slane %v1459_v39, %v800_v45 }
 0x119   : > { %v728_v59 = vmax.f32 %v724_v54, 0.0  ;;  %v735_v60 = vadd.f32 %v731_v49, %v727_v53 }
 0x11a   : > { %v726_v61 = vmax.f32 %v722_v57, 0.0  ;;  %v733_v62 = vadd.f32 %v729_v52, %v725_v56 }
 0x11b   : > { %v743_v63 = vsel %vm301_vm0, %v735_v60, 0.0  ;;  %v736_v0 = vadd.f32 %v732_v55, %v728_v59 }
 0x11c   : > { %744 = vadd.xlane.f32.xlu1 %v743_v63  ;;  %v737_v1 = vsel %vm301_vm0, %v733_v62, 0.0  ;;  %v734_v2 = vadd.f32 %v730_v58, %v726_v61  ;;  %v1320_v63 = vld [vmem:[%s1520_s4] sm:$0xff]  }
 0x11d   : > { %738 = vadd.xlane.f32.xlu0 %v737_v1  ;;  %v746_v3 = vsel %vm301_vm0, %v736_v0, 0.0  ;;  %1272 = vmatprep.subr.bf16.mxu1 %v1320_v63  ;;  %v814_v1 = vsub.s32 3, %v1453_v37 }
 0x11e   : > { %v740_v4 = vsel %vm301_vm0, %v734_v2, 0.0 }
 0x120   : > { %747 = vadd.xlane.f32.xlu1 %v746_v3 }
 0x121   : > { %741 = vadd.xlane.f32.xlu0 %v740_v4 }
 0x1a9   : > { %v745_v5 = vpop.xlane.xlu1 %744 }
 0x1aa   : > { %v752_v6 = vmul.f32 0.03125, %v745_v5  ;;  %v739_v7 = vpop.xlane.xlu0 %738 }
 0x1ab   : > { %v750_v8 = vmul.f32 0.03125, %v739_v7 }
 0x1ac   : > { %v756_v9 = vsub.f32 %v735_v60, %v752_v6 }
 0x1ad   : > { %v754_v10 = vsub.f32 %v733_v62, %v750_v8  ;;  %v748_v11 = vpop.xlane.xlu1 %747 }
 0x1ae   : > { %v753_v12 = vmul.f32 0.03125, %v748_v11  ;;  %v742_v13 = vpop.xlane.xlu0 %741  ;;  %v760_v19 = vmul.f32 %v756_v9, %v756_v9 }
 0x1af   : > { %v751_v14 = vmul.f32 0.03125, %v742_v13  ;;  %v758_v15 = vmul.f32 %v754_v10, %v754_v10 }
 0x1b0   : > { %v757_v16 = vsub.f32 %v736_v0, %v753_v12  ;;  %v768_v21 = vsel %vm301_vm0, %v760_v19, 0.0  ;;  %v1321_v0 = vld [vmem:[%s1520_s4 + $0x8] sm:$0xff]  }
 0x1b1   : > { %v755_v17 = vsub.f32 %v734_v2, %v751_v14  ;;  %v762_v18 = vsel %vm301_vm0, %v758_v15, 0.0  ;;  %v815_v2 = vrot.slane %v1459_v39, %v814_v1 }
 0x1b2   : > { %763 = vadd.xlane.f32.xlu0 %v762_v18  ;;  %v761_v23 = vmul.f32 %v757_v16, %v757_v16 }
 0x1b3   : > { %v759_v20 = vmul.f32 %v755_v17, %v755_v17 }
 0x1b4   : > { %v771_v24 = vsel %vm301_vm0, %v761_v23, 0.0 }
 0x1b5   : > { %v765_v22 = vsel %vm301_vm0, %v759_v20, 0.0 }
 0x1b6   : > { %769 = vadd.xlane.f32.xlu0 %v768_v21  ;;  %766 = vadd.xlane.f32.xlu1 %v765_v22 }
 0x1ba   : > { %772 = vadd.xlane.f32.xlu1 %v771_v24 }
 0x23f   : > { %v764_v27 = vpop.xlane.xlu0 %763 }
 0x240   : > { %v774_v28 = vmul.f32 0.03125, %v764_v27 }
 0x242   : > { %v778_v29 = vadd.f32 1e-05, %v774_v28 }
 0x243   : > { %v767_v30 = vpop.xlane.xlu1 %766  ;;  %v770_v31 = vpop.xlane.xlu0 %769 }
 0x244   : > { %1322 = vrsqrt.f32 %v778_v29  ;;  %v775_v32 = vmul.f32 0.03125, %v767_v30  ;;  %v776_v33 = vmul.f32 0.03125, %v770_v31 }
 0x246   : > { %v779_v34 = vadd.f32 1e-05, %v775_v32  ;;  %v780_v35 = vadd.f32 1e-05, %v776_v33 }
 0x247   : > { %v773_v36 = vpop.xlane.xlu1 %772 }
 0x248   : > { %1324 = vrsqrt.f32 %v779_v34  ;;  %v777_v38 = vmul.f32 0.03125, %v773_v36 }
 0x249   : > { %1326 = vrsqrt.f32 %v780_v35 }
 0x24a   : > { %v781_v40 = vadd.f32 1e-05, %v777_v38 }
 0x24c   : > { %1328 = vrsqrt.f32 %v781_v40 }
 0x24e   : > { %v1323_v42 = vpop.eup %1322 }
 0x24f   : > { %v786_v43 = vmul.f32 %v1323_v42, %v754_v10 }
 0x251   : > { %v794_v49 = vmul.f32 %v793_v44, %v786_v43 }
 0x252   : > { %v1325_v46 = vpop.eup %1324 }
 0x253   : > { %v1327_v47 = vpop.eup %1326  ;;  %v787_v48 = vmul.f32 %v1325_v46, %v755_v17  ;;  %v802_v56 = vadd.f32 %v801_v50, %v794_v49  ;;  %v895_v17 = vsub.s32 4, %v1453_v37 }
 0x254   : > { %v788_v51 = vmul.f32 %v1327_v47, %v756_v9 }
 0x255   : > { %v795_v52 = vmul.f32 %v793_v44, %v787_v48  ;;  %v896_v18 = vrot.slane %v1459_v39, %v895_v17 }
 0x256   : > { %v1329_v53 = vpop.eup %1328  ;;  %v796_v54 = vmul.f32 %v793_v44, %v788_v51 }
 0x257   : > { %v789_v55 = vmul.f32 %v1329_v53, %v757_v16  ;;  %v803_v57 = vadd.f32 %v801_v50, %v795_v52 }
 0x258   : > { %v804_v60 = vadd.f32 %v801_v50, %v796_v54 }
 0x259   : > { %v797_v58 = vmul.f32 %v793_v44, %v789_v55  ;;  %v806_v59 = vpack.c.bf16 %v803_v57, %v802_v56 }
 0x25b   : > { %1268 = vmatprep.mubr.msk.bf16.mxu1 %vm301_vm0, %v806_v59  ;;  %v805_v61 = vadd.f32 %v801_v50, %v797_v58 }
 0x25d   : > { %v807_v62 = vpack.c.bf16 %v805_v61, %v804_v60 }
 0x25f   : > { %1269 = vmatmul.mubr.msk.bf16.vlgmr.msra.gmra.mrb[4].mxu1 %vm301_vm0, %v807_v62 }
 0x260   : > { %1273 = vmatpush3.bf16.msra.mxu1 %v1320_v63 }
 0x261   : > { %1274 = vmatprep.subr.bf16.mxu1 %v1321_v0 }
 0x264   : > { %1275 = vmatpush3.bf16.msra.mxu1 %v1321_v0 }
 0x332   : > { %v1270_v3 = vpop.f32.mrb[4].mxu1 }
 0x333   : > { %v877_v4 = vadd.f32 %v1270_v3, %v815_v2  ;;  %v868_v5 = vpop.f32.mrb[5].mxu1 }
 0x334   : > { %v869_v6 = vadd.f32 %v868_v5, %v815_v2  ;;  %v1271_v7 = vpop.f32.mrb[6].mxu1  ;;  %v1022_v5 = vsub.s32 5, %v1453_v37 }
 0x335   : > { %v880_v8 = vadd.f32 %v1271_v7, %v815_v2  ;;  %v871_v9 = vpop.f32.mrb[7].mxu1  ;;  %v885_v11 = vmax.f32 %v877_v4, 0.0 }
 0x336   : > { %v872_v10 = vadd.f32 %v871_v9, %v815_v2  ;;  %v883_v13 = vmax.f32 %v869_v6, 0.0  ;;  %v1030_v6 = vsub.s32 6, %v1453_v37  ;;  %v1023_v7 = vrot.slane %v1459_v39, %v1022_v5 }
 0x337   : > { %v886_v12 = vmax.f32 %v880_v8, 0.0 }
 0x338   : > { %v884_v14 = vmax.f32 %v872_v10, 0.0  ;;  %v1031_v9 = vrot.slane %v1459_v39, %v1030_v6 }
 0x339   : > { %v888_v15 = vpack.c.bf16 %v886_v12, %v885_v11 }
 0x33a   : > { %v887_v16 = vpack.c.bf16 %v884_v14, %v883_v13 }
 0x33c   : > { %1276 = vmatprep.mubr.msk.bf16.mxu1 %vm301_vm0, %v887_v16 }
 0x33d   : > { %1277 = vmatmul.mubr.msk.bf16.vlgmr.msra.gmra.mrb[8].mxu1 %vm301_vm0, %v888_v15 }
 0x410   : > { %v1278_v19 = vpop.f32.mrb[8].mxu1 }
 0x411   : > { %v949_v20 = vpop.f32.mrb[9].mxu1  ;;  %v958_v21 = vadd.f32 %v1278_v19, %v896_v18 }
 0x412   : > { %v950_v22 = vadd.f32 %v949_v20, %v896_v18  ;;  %v1279_v23 = vpop.f32.mrb[10].mxu1 }
 0x413   : > { %v952_v24 = vpop.f32.mrb[11].mxu1  ;;  %v961_v25 = vadd.f32 %v1279_v23, %v896_v18  ;;  %v966_v30 = vadd.f32 %v958_v21, %v804_v60 }
 0x414   : > { %v953_v26 = vadd.f32 %v952_v24, %v896_v18  ;;  %v964_v27 = vadd.f32 %v950_v22, %v802_v56 }
 0x415   : > { %v967_v32 = vadd.f32 %v961_v25, %v805_v61  ;;  %v974_v33 = vsel %vm301_vm0, %v966_v30, 0.0 }
 0x416   : > { %v968_v28 = vsel %vm301_vm0, %v964_v27, 0.0  ;;  %v965_v29 = vadd.f32 %v953_v26, %v803_v57 }
 0x417   : > { %969 = vadd.xlane.f32.xlu0 %v968_v28  ;;  %v977_v34 = vsel %vm301_vm0, %v967_v32, 0.0 }
 0x418   : > { %v971_v31 = vsel %vm301_vm0, %v965_v29, 0.0 }
 0x419   : > { %972 = vadd.xlane.f32.xlu1 %v971_v31 }
 0x41b   : > { %975 = vadd.xlane.f32.xlu0 %v974_v33 }
 0x41d   : > { %978 = vadd.xlane.f32.xlu1 %v977_v34 }
 0x4a4   : > { %v970_v35 = vpop.xlane.xlu0 %969 }
 0x4a5   : > { %v980_v36 = vmul.f32 0.03125, %v970_v35 }
 0x4a6   : > { %v973_v38 = vpop.xlane.xlu1 %972 }
 0x4a7   : > { %v984_v40 = vsub.f32 %v964_v27, %v980_v36  ;;  %v981_v41 = vmul.f32 0.03125, %v973_v38 }
 0x4a8   : > { %v976_v42 = vpop.xlane.xlu0 %975 }
 0x4a9   : > { %v985_v43 = vsub.f32 %v965_v29, %v981_v41  ;;  %v982_v44 = vmul.f32 0.03125, %v976_v42  ;;  %v988_v45 = vmul.f32 %v984_v40, %v984_v40 }
 0x4aa   : > { %v979_v46 = vpop.xlane.xlu1 %978 }
 0x4ab   : > { %v986_v47 = vsub.f32 %v966_v30, %v982_v44  ;;  %v983_v48 = vmul.f32 0.03125, %v979_v46  ;;  %v992_v49 = vsel %vm301_vm0, %v988_v45, 0.0  ;;  %v989_v50 = vmul.f32 %v985_v43, %v985_v43 }
 0x4ac   : > { %993 = vadd.xlane.f32.xlu0 %v992_v49 }
 0x4ad   : > { %v987_v51 = vsub.f32 %v967_v32, %v983_v48  ;;  %v995_v52 = vsel %vm301_vm0, %v989_v50, 0.0  ;;  %v990_v53 = vmul.f32 %v986_v47, %v986_v47 }
 0x4ae   : > { %996 = vadd.xlane.f32.xlu1 %v995_v52 }
 0x4af   : > { %v998_v54 = vsel %vm301_vm0, %v990_v53, 0.0  ;;  %v991_v55 = vmul.f32 %v987_v51, %v987_v51 }
 0x4b0   : > { %999 = vadd.xlane.f32.xlu0 %v998_v54 }
 0x4b1   : > { %v1001_v56 = vsel %vm301_vm0, %v991_v55, 0.0 }
 0x4b2   : > { %1002 = vadd.xlane.f32.xlu1 %v1001_v56 }
 0x539   : > { %v994_v57 = vpop.xlane.xlu0 %993 }
 0x53a   : > { %v1004_v58 = vmul.f32 0.03125, %v994_v57 }
 0x53b   : > { %v997_v59 = vpop.xlane.xlu1 %996 }
 0x53c   : > { %v1008_v60 = vadd.f32 1e-05, %v1004_v58  ;;  %v1005_v61 = vmul.f32 0.03125, %v997_v59 }
 0x53d   : > { %v1000_v62 = vpop.xlane.xlu0 %999 }
 0x53e   : > { %1330 = vrsqrt.f32 %v1008_v60  ;;  %v1009_v63 = vadd.f32 1e-05, %v1005_v61  ;;  %v1006_v0 = vmul.f32 0.03125, %v1000_v62 }
 0x53f   : > { %v1003_v1 = vpop.xlane.xlu1 %1002 }
 0x540   : > { %1332 = vrsqrt.f32 %v1009_v63  ;;  %v1010_v2 = vadd.f32 1e-05, %v1006_v0  ;;  %v1007_v3 = vmul.f32 0.03125, %v1003_v1 }
 0x542   : > { %1334 = vrsqrt.f32 %v1010_v2  ;;  %v1011_v4 = vadd.f32 1e-05, %v1007_v3 }
 0x544   : > { %1336 = vrsqrt.f32 %v1011_v4 }
 0x548   : > { %v1331_v8 = vpop.eup %1330 }
 0x549   : > { %v1016_v10 = vmul.f32 %v1331_v8, %v984_v40 }
 0x54a   : > { %v1333_v11 = vpop.eup %1332 }
 0x54b   : > { %v1024_v12 = vmul.f32 %v1023_v7, %v1016_v10  ;;  %v1017_v13 = vmul.f32 %v1333_v11, %v985_v43 }
 0x54c   : > { %v1335_v14 = vpop.eup %1334 }
 0x54d   : > { %v1032_v15 = vadd.f32 %v1031_v9, %v1024_v12  ;;  %v1025_v16 = vmul.f32 %v1023_v7, %v1017_v13  ;;  %v1018_v17 = vmul.f32 %v1335_v14, %v986_v47 }
 0x54e   : > { %v1337_v18 = vpop.eup %1336 }
 0x54f   : > { %v1192_v37 = vpack.c.bf16 %v1032_v15, %v1032_v15  ;;  %v1033_v19 = vadd.f32 %v1031_v9, %v1025_v16  ;;  %v1026_v20 = vmul.f32 %v1023_v7, %v1018_v17  ;;  %v1019_v21 = vmul.f32 %v1337_v18, %v987_v51 }
 0x551   : > { %1053 = vst.msk [vmem:[%s282_s22] sm:$0xf] %vm1052_vm2, %v1192_v37  ;;  %v1193_v39 = vpack.c.bf16 %v1033_v19, %v1033_v19  ;;  %v1034_v22 = vadd.f32 %v1031_v9, %v1026_v20  ;;  %v1027_v23 = vmul.f32 %v1023_v7, %v1019_v21 }
 0x553   : > { %1054 = vst.msk [vmem:[%s282_s22 + $0x4] sm:$0xf] %vm1052_vm2, %v1193_v39  ;;  %v1194_v24 = vpack.c.bf16 %v1034_v22, %v1034_v22  ;;  %v1035_v25 = vadd.f32 %v1031_v9, %v1027_v23 }
 0x555   : > { %1055 = vst.msk [vmem:[%s282_s22 + $0x8] sm:$0xf] %vm1052_vm2, %v1194_v24  ;;  %v1195_v26 = vpack.c.bf16 %v1035_v25, %v1035_v25 }
 0x557   : > { %1056 = vst.msk [vmem:[%s282_s22 + $0xc] sm:$0xf] %vm1052_vm2, %v1195_v26 }
 0x558 PF: > { %s16_s21 = sadd.s32 1, %s1344_s21  }
 0x559   : > { %p13_p6 = scmp.ge.s32.totalorder %s16_s21, 4  }
 0x55b   :  { %15 = sbr.rel (!%p13_p6) target bundleno = 1 (0x1), region = 81 }

</bundles_post_ra>
